<compile_context>
chip_gen: v5e
topology: v5e:2x2
jax: 0.10.0
libtpu: 0.0.40
codegen_flags: <defaults>
</compile_context>

<pallas_src>
import functools
import math

import jax
import jax.numpy as jnp
from jax.experimental import pallas as pl
from jax.experimental.pallas import tpu as pltpu

# Small, module-consistent sizes (d_model = h * d_k, lane-dense at 128).
D_MODEL = 128
H = 4
D_K = 32
D_V = 32
D_FF = 256
LN_EPS = 1e-5
MXU_DTYPE = jnp.bfloat16  # operands of the big MXU dots (accumulation stays f32)


def _layernorm(x, gamma, beta):
    mean = jnp.mean(x, axis=-1, keepdims=True)
    cx = x - mean
    var = jnp.mean(cx * cx, axis=-1, keepdims=True)  # unbiased=False (PyTorch LN)
    return cx * jax.lax.rsqrt(var + LN_EPS) * gamma + beta


def _encoder_layer_kernel(seq_len, exp_dtype,
                          q_ref, k_ref, v_ref,
                          wqkv_ref, wo_ref, w1_ref, b1_ref, w2_ref, vecs_ref,
                          o_ref):
    rows, dm = q_ref.shape
    nb = rows // seq_len

    # Packed (1, d_model) row-vector params.
    bq, bk, bv, bo, g1, be1, b2, g2, be2 = (vecs_ref[i:i + 1, :] for i in range(9))

    qb = q_ref[...].astype(MXU_DTYPE)   # identity cast when input is already bf16
    kb = k_ref[...].astype(MXU_DTYPE)
    vb = v_ref[...].astype(MXU_DTYPE)

    # Fused 128-wide projections (batch folded into the MXU M dimension).
    # 1/sqrt(d_k) is already folded into wqkv[0] / bq by the wrapper.
    qp = (jnp.dot(qb, wqkv_ref[0], preferred_element_type=jnp.float32) + bq
          ).astype(MXU_DTYPE)
    kp = (jnp.dot(kb, wqkv_ref[1], preferred_element_type=jnp.float32) + bk
          ).astype(MXU_DTYPE)
    vp = (jnp.dot(vb, wqkv_ref[2], preferred_element_type=jnp.float32) + bv
          ).astype(MXU_DTYPE)

    qp3 = qp.reshape(nb, seq_len, dm)
    kp3 = kp.reshape(nb, seq_len, dm)
    vp3 = vp.reshape(nb, seq_len, dm)

    head_out = []
    for h in range(H):                      # static, 4-way unrolled head loop
        c0 = h * D_K
        qh = qp3[:, :, c0:c0 + D_K]
        kh = kp3[:, :, c0:c0 + D_K]
        vh = vp3[:, :, c0:c0 + D_V]
        # Batched scores over the (folded) batch dim: (nb, N, N).
        s = jax.lax.dot_general(qh, kh, (((2,), (2,)), ((0,), (0,))),
                                preferred_element_type=jnp.float32)
        s = s - jnp.max(s, axis=-1, keepdims=True)
        p = jnp.exp(s.astype(exp_dtype))
        denom = jnp.sum(p, axis=-1, keepdims=True, dtype=jnp.float32)
        pv = jax.lax.dot_general(p.astype(MXU_DTYPE), vh,
                                 (((2,), (1,)), ((0,), (0,))),
                                 preferred_element_type=jnp.float32)
        # Deferred softmax normalization on the small (nb, N, D_V) result.
        head_out.append(pv * pl.reciprocal(denom, approx=True))

    heads = jnp.concatenate(head_out, axis=-1).reshape(rows, dm)

    # Single 128-wide fc_o dot.
    att = jnp.dot(heads.astype(MXU_DTYPE), wo_ref[...],
                  preferred_element_type=jnp.float32) + bo

    # Residual + LayerNorm (dropout = identity at eval).
    x1 = _layernorm(q_ref[...].astype(jnp.float32) + att, g1, be1)

    # Position-wise feed forward: LN(x1 + fc2(relu(fc1(x1)))).
    hdn = jnp.maximum(
        jnp.dot(x1.astype(MXU_DTYPE), w1_ref[...],
                preferred_element_type=jnp.float32) + b1_ref[...], 0.0)
    ffo = jnp.dot(hdn.astype(MXU_DTYPE), w2_ref[...],
                  preferred_element_type=jnp.float32) + b2
    o_ref[...] = _layernorm(x1 + ffo, g2, be2).astype(o_ref.dtype)


def _pick_batches_per_block(B, N, target_rows):
    """Whole sequences per block; ~target_rows rows; 8-row aligned (or full)."""
    total = B * N
    if total <= target_rows:
        return B
    cands = [d for d in range(1, B + 1)
             if B % d == 0 and ((d * N) % 8 == 0 or d == B)]
    ge = [d for d in cands if d * N >= target_rows]
    return min(ge) if ge else max(cands)


def _vmem_block_bytes(rows, N, in_item, out_item):
    """Rough per-grid-step VMEM footprint (for vmem_limit_bytes)."""
    nb = rows // N
    slab = rows * D_MODEL
    p = 0
    p += 3 * 2 * slab * in_item                                   # q/k/v, double-buffered
    p += 2 * slab * out_item                                      # output, double-buffered
    p += 2 * 2 * (3 * D_MODEL * D_MODEL + D_MODEL * D_MODEL
                  + D_MODEL * D_FF + D_FF * D_MODEL)              # bf16 weights
    p += 2 * 4 * (9 * D_MODEL + D_FF)                             # f32 vector params
    p += 3 * slab * 2                                             # qp/kp/vp bf16
    p += 4 * slab * 4                                             # q32/att/x1/heads f32
    p += rows * D_FF * 4                                          # hdn f32
    p += 3 * nb * N * N * 4                                       # scores / probs (1 head live)
    p += H * nb * N * D_V * 4                                     # head_out accumulators
    return p


def encoder_layer(q, k, v, params, *, target_rows=1024, exp_dtype=None,
                  out_dtype=None):
    B, N, dm = q.shape
    assert dm == D_MODEL

    kind = jax.devices()[0].device_kind.lower()
    if exp_dtype is None:
        # bf16 EUP path exists on v6e / v7x; keep exp in f32 on v5e and older.
        exp_dtype = jnp.bfloat16 if ("v6" in kind or "v7" in kind) else jnp.float32
    if out_dtype is None:
        out_dtype = q.dtype                  # bf16 in -> bf16 out halves HBM writes

    bpb = _pick_batches_per_block(B, N, target_rows)
    rows_per_block = bpb * N
    total_rows = B * N
    assert total_rows % rows_per_block == 0

    # Fold batch into rows (free layout plumbing in the wrapper).
    qf = q.reshape(total_rows, dm)
    kf = k.reshape(total_rows, dm)
    vf = v.reshape(total_rows, dm)

    # --- Pack / prepare parameters (6 consolidated arrays) --------------------
    scale = 1.0 / math.sqrt(D_K)             # folded into wq / bq
    wqkv = jnp.stack([params["wq"] * scale, params["wk"], params["wv"]],
                     axis=0).astype(MXU_DTYPE)                    # (3, dm, dm)
    wo = params["wo"].astype(MXU_DTYPE)                           # (dm, dm)
    w1 = params["w1"].astype(MXU_DTYPE)                           # (dm, D_FF)
    b1 = params["b1"].astype(jnp.float32)                         # (1, D_FF)
    w2 = params["w2"].astype(MXU_DTYPE)                           # (D_FF, dm)
    vecs = jnp.concatenate([params["bq"] * scale, params["bk"], params["bv"],
                            params["bo"], params["g1"], params["be1"],
                            params["b2"], params["g2"], params["be2"]],
                           axis=0).astype(jnp.float32)            # (9, dm)

    row_spec = pl.BlockSpec((rows_per_block, dm), lambda r: (r, 0))

    def resident(p):                          # full-array block, resident weights
        return pl.BlockSpec(p.shape, lambda r, nd=p.ndim: (0,) * nd)

    param_list = [wqkv, wo, w1, b1, w2, vecs]
    in_specs = [row_spec, row_spec, row_spec] + [resident(p) for p in param_list]

    # Advisory cost estimate for the XLA scheduler.
    flops = (2 * total_rows * dm * dm * 3                 # q/k/v projections
             + 2 * B * H * N * N * (D_K + D_V)            # scores + PV
             + 2 * total_rows * dm * dm                   # fc_o
             + 2 * total_rows * dm * D_FF * 2)            # fc1 + fc2
    transcendentals = B * H * N * N + B * H * N + 2 * total_rows
    bytes_accessed = (3 * total_rows * dm * qf.dtype.itemsize
                      + sum(int(x.size) * x.dtype.itemsize for x in param_list)
                      + total_rows * dm * jnp.dtype(out_dtype).itemsize)

    # VMEM budget: cap for v7x's 64 MiB physical VMEM, 128 MiB on v5e/v6e.
    vmem_cap = (64 << 20) if "v7" in kind else (128 << 20)
    est = _vmem_block_bytes(rows_per_block, N, qf.dtype.itemsize,
                            jnp.dtype(out_dtype).itemsize)
    vmem_limit = int(min(vmem_cap - (8 << 20), max(32 << 20, int(1.25 * est))))

    out = pl.pallas_call(
        functools.partial(_encoder_layer_kernel, N, exp_dtype),
        out_shape=jax.ShapeDtypeStruct((total_rows, dm), out_dtype),
        grid_spec=pltpu.PrefetchScalarGridSpec(
            num_scalar_prefetch=0,
            grid=(B // bpb,),
            in_specs=in_specs,
            out_specs=row_spec,
        ),
        compiler_params=pltpu.CompilerParams(
            dimension_semantics=("parallel",),
            vmem_limit_bytes=vmem_limit),
        cost_estimate=pl.CostEstimate(flops=int(flops),
                                      transcendentals=int(transcendentals),
                                      bytes_accessed=int(bytes_accessed)),
    )(qf, kf, vf, *param_list)

    return out.reshape(B, N, dm)


def reference(q, k, v, p, matmul_dtype=jnp.float32):
    """Plain-JAX reference matching the PyTorch forward (eval mode).

    `matmul_dtype` applies the same operand casts as the kernel's MXU dots so the
    comparison isolates kernel correctness from the intended bf16 precision.
    """
    B, N, dm = q.shape
    md = matmul_dtype

    def mm(a, w):
        return jnp.dot(a.astype(md), w.astype(md), preferred_element_type=jnp.float32)

    qp = (mm(q, p["wq"]) + p["bq"]).reshape(B, N, H, D_K)
    kp = (mm(k, p["wk"]) + p["bk"]).reshape(B, N, H, D_K)
    vp = (mm(v, p["wv"]) + p["bv"]).reshape(B, N, H, D_V)
    s = jnp.einsum("bqhd,bkhd->bhqk", qp, kp) / math.sqrt(D_K)
    a = jax.nn.softmax(s, axis=-1)
    o = jnp.einsum("bhqk,bkhd->bqhd", a, vp).reshape(B, N, H * D_V)
    att = mm(o, p["wo"]) + p["bo"]

    def ln(x, g, b):
        m = jnp.mean(x, axis=-1, keepdims=True)
        var = jnp.mean((x - m) ** 2, axis=-1, keepdims=True)
        return (x - m) / jnp.sqrt(var + LN_EPS) * g + b

    x1 = ln(q.astype(jnp.float32) + att, p["g1"], p["be1"])
    hdn = jax.nn.relu(mm(x1, p["w1"]) + p["b1"])
    ffo = mm(hdn, p["w2"]) + p["b2"]
    return ln(x1 + ffo, p["g2"], p["be2"])


def init_params(key):
    ks = jax.random.split(key, 6)

    def w(kk, shape, fan_in):
        return jax.random.normal(kk, shape, jnp.float32) / math.sqrt(fan_in)

    return {
        "wq": w(ks[0], (D_MODEL, H * D_K), D_MODEL),
        "bq": jnp.zeros((1, H * D_K), jnp.float32),
        "wk": w(ks[1], (D_MODEL, H * D_K), D_MODEL),
        "bk": jnp.zeros((1, H * D_K), jnp.float32),
        "wv": w(ks[2], (D_MODEL, H * D_V), D_MODEL),
        "bv": jnp.zeros((1, H * D_V), jnp.float32),
        "wo": w(ks[3], (H * D_V, D_MODEL), H * D_V),
        "bo": jnp.full((1, D_MODEL), 0.01, jnp.float32),
        "g1": jnp.ones((1, D_MODEL), jnp.float32),
        "be1": jnp.zeros((1, D_MODEL), jnp.float32),
        "w1": w(ks[4], (D_MODEL, D_FF), D_MODEL),
        "b1": jnp.full((1, D_FF), 0.02, jnp.float32),
        "w2": w(ks[5], (D_FF, D_MODEL), D_FF),
        "b2": jnp.full((1, D_MODEL), -0.01, jnp.float32),
        "g2": jnp.ones((1, D_MODEL), jnp.float32),
        "be2": jnp.zeros((1, D_MODEL), jnp.float32),
    }


if __name__ == "__main__":
    B, N = 4, 8
    key = jax.random.PRNGKey(0)
    kq, kk, kv, kp = jax.random.split(key, 4)
    # bf16 producer dtype: halves the HBM traffic of this mem-bound layer.
    q = jax.random.normal(kq, (B, N, D_MODEL), jnp.bfloat16)
    k = jax.random.normal(kk, (B, N, D_MODEL), jnp.bfloat16)
    v = jax.random.normal(kv, (B, N, D_MODEL), jnp.bfloat16)
    params = init_params(kp)

    # Default block choice (single block at this tiny size).
    out = jax.block_until_ready(encoder_layer(q, k, v, params))
    # Force a multi-step pipelined grid (2 blocks) to exercise that path too.
    out_tiled = jax.block_until_ready(
        encoder_layer(q, k, v, params, target_rows=16))

    # Reference uses the same bf16 operand casts as the kernel's MXU dots; residual
    # mismatch is the approximate softmax reciprocal, exp precision, accumulation
    # order and the bf16 output cast.
    ref = reference(q, k, v, params, matmul_dtype=MXU_DTYPE)
    assert out.shape == (B, N, D_MODEL)
    err1 = jnp.max(jnp.abs(out.astype(jnp.float32) - ref))
    err2 = jnp.max(jnp.abs(out_tiled.astype(jnp.float32) - ref))
    assert jnp.allclose(out.astype(jnp.float32), ref, atol=2e-2, rtol=2e-2), (
        f"max abs err {err1}")
    assert jnp.allclose(out_tiled.astype(jnp.float32), ref, atol=2e-2, rtol=2e-2), (
        f"max abs err {err2}")
    print("KERNEL_OK")
</pallas_src>

<mosaic_0001>
module attributes {stable_mosaic.version = 11 : i64} {
  func.func @_encoder_layer_kernel(%arg0: i32, %arg1: memref<32x128xbf16, #tpu.memory_space<vmem>>, %arg2: memref<32x128xbf16, #tpu.memory_space<vmem>>, %arg3: memref<32x128xbf16, #tpu.memory_space<vmem>>, %arg4: memref<3x128x128xbf16, #tpu.memory_space<vmem>>, %arg5: memref<128x128xbf16, #tpu.memory_space<vmem>>, %arg6: memref<128x256xbf16, #tpu.memory_space<vmem>>, %arg7: memref<1x256xf32, #tpu.memory_space<vmem>>, %arg8: memref<256x128xbf16, #tpu.memory_space<vmem>>, %arg9: memref<9x128xf32, #tpu.memory_space<vmem>>, %arg10: memref<32x128xbf16, #tpu.memory_space<vmem>>) attributes {dimension_semantics = [#tpu.dimension_semantics<parallel>], iteration_bounds = array<i64: 1>, scalar_prefetch = 0 : i64, scratch_operands = 0 : i64, tpu.core_type = #tpu.core_type<tc>, window_params = [{transform_indices = @transform_0, window_bounds = array<i64: 32, 128>}, {transform_indices = @transform_1, window_bounds = array<i64: 32, 128>}, {transform_indices = @transform_2, window_bounds = array<i64: 32, 128>}, {pipeline_mode = #tpu.pipeline_mode<synchronous>, transform_indices = @transform_3, window_bounds = array<i64: 3, 128, 128>}, {pipeline_mode = #tpu.pipeline_mode<synchronous>, transform_indices = @transform_4, window_bounds = array<i64: 128, 128>}, {pipeline_mode = #tpu.pipeline_mode<synchronous>, transform_indices = @transform_5, window_bounds = array<i64: 128, 256>}, {pipeline_mode = #tpu.pipeline_mode<synchronous>, transform_indices = @transform_6, window_bounds = array<i64: 1, 256>}, {pipeline_mode = #tpu.pipeline_mode<synchronous>, transform_indices = @transform_7, window_bounds = array<i64: 256, 128>}, {pipeline_mode = #tpu.pipeline_mode<synchronous>, transform_indices = @transform_8, window_bounds = array<i64: 9, 128>}, {transform_indices = @transform_9, window_bounds = array<i64: 32, 128>}]} {
    %c0 = arith.constant 0 : index
    %c0_0 = arith.constant 0 : index
    %0 = vector.load %arg9[%c0, %c0_0] : memref<9x128xf32, #tpu.memory_space<vmem>>, vector<1x128xf32>
    %c1 = arith.constant 1 : index
    %c0_1 = arith.constant 0 : index
    %1 = vector.load %arg9[%c1, %c0_1] : memref<9x128xf32, #tpu.memory_space<vmem>>, vector<1x128xf32>
    %c2 = arith.constant 2 : index
    %c0_2 = arith.constant 0 : index
    %2 = vector.load %arg9[%c2, %c0_2] : memref<9x128xf32, #tpu.memory_space<vmem>>, vector<1x128xf32>
    %c3 = arith.constant 3 : index
    %c0_3 = arith.constant 0 : index
    %3 = vector.load %arg9[%c3, %c0_3] : memref<9x128xf32, #tpu.memory_space<vmem>>, vector<1x128xf32>
    %c4 = arith.constant 4 : index
    %c0_4 = arith.constant 0 : index
    %4 = vector.load %arg9[%c4, %c0_4] : memref<9x128xf32, #tpu.memory_space<vmem>>, vector<1x128xf32>
    %c5 = arith.constant 5 : index
    %c0_5 = arith.constant 0 : index
    %5 = vector.load %arg9[%c5, %c0_5] : memref<9x128xf32, #tpu.memory_space<vmem>>, vector<1x128xf32>
    %c6 = arith.constant 6 : index
    %c0_6 = arith.constant 0 : index
    %6 = vector.load %arg9[%c6, %c0_6] : memref<9x128xf32, #tpu.memory_space<vmem>>, vector<1x128xf32>
    %c7 = arith.constant 7 : index
    %c0_7 = arith.constant 0 : index
    %7 = vector.load %arg9[%c7, %c0_7] : memref<9x128xf32, #tpu.memory_space<vmem>>, vector<1x128xf32>
    %c8 = arith.constant 8 : index
    %c0_8 = arith.constant 0 : index
    %8 = vector.load %arg9[%c8, %c0_8] : memref<9x128xf32, #tpu.memory_space<vmem>>, vector<1x128xf32>
    %c0_9 = arith.constant 0 : index
    %c0_10 = arith.constant 0 : index
    %9 = vector.load %arg1[%c0_9, %c0_10] : memref<32x128xbf16, #tpu.memory_space<vmem>>, vector<32x128xbf16>
    %c0_11 = arith.constant 0 : index
    %c0_12 = arith.constant 0 : index
    %10 = vector.load %arg2[%c0_11, %c0_12] : memref<32x128xbf16, #tpu.memory_space<vmem>>, vector<32x128xbf16>
    %c0_13 = arith.constant 0 : index
    %c0_14 = arith.constant 0 : index
    %11 = vector.load %arg3[%c0_13, %c0_14] : memref<32x128xbf16, #tpu.memory_space<vmem>>, vector<32x128xbf16>
    %c0_15 = arith.constant 0 : index
    %c0_16 = arith.constant 0 : index
    %c0_17 = arith.constant 0 : index
    %12 = vector.load %arg4[%c0_15, %c0_16, %c0_17] : memref<3x128x128xbf16, #tpu.memory_space<vmem>>, vector<1x128x128xbf16>
    %13 = vector.shape_cast %12 : vector<1x128x128xbf16> to vector<128x128xbf16>
    %cst = arith.constant dense<0.000000e+00> : vector<32x128xf32>
    %14 = tpu.matmul %9, %13, %cst {dimension_numbers = #tpu.dot_dimension_numbers<[1], [0], [0], [1], [0, 0, 1, 1], [], []>} : vector<32x128xbf16>, vector<128x128xbf16>, vector<32x128xf32> -> vector<32x128xf32>
    %15 = vector.broadcast %0 : vector<1x128xf32> to vector<32x128xf32>
    %16 = arith.addf %14, %15 : vector<32x128xf32>
    %17 = arith.truncf %16 : vector<32x128xf32> to vector<32x128xbf16>
    %c1_18 = arith.constant 1 : index
    %c0_19 = arith.constant 0 : index
    %c0_20 = arith.constant 0 : index
    %18 = vector.load %arg4[%c1_18, %c0_19, %c0_20] : memref<3x128x128xbf16, #tpu.memory_space<vmem>>, vector<1x128x128xbf16>
    %19 = vector.shape_cast %18 : vector<1x128x128xbf16> to vector<128x128xbf16>
    %cst_21 = arith.constant dense<0.000000e+00> : vector<32x128xf32>
    %20 = tpu.matmul %10, %19, %cst_21 {dimension_numbers = #tpu.dot_dimension_numbers<[1], [0], [0], [1], [0, 0, 1, 1], [], []>} : vector<32x128xbf16>, vector<128x128xbf16>, vector<32x128xf32> -> vector<32x128xf32>
    %21 = vector.broadcast %1 : vector<1x128xf32> to vector<32x128xf32>
    %22 = arith.addf %20, %21 : vector<32x128xf32>
    %23 = arith.truncf %22 : vector<32x128xf32> to vector<32x128xbf16>
    %c2_22 = arith.constant 2 : index
    %c0_23 = arith.constant 0 : index
    %c0_24 = arith.constant 0 : index
    %24 = vector.load %arg4[%c2_22, %c0_23, %c0_24] : memref<3x128x128xbf16, #tpu.memory_space<vmem>>, vector<1x128x128xbf16>
    %25 = vector.shape_cast %24 : vector<1x128x128xbf16> to vector<128x128xbf16>
    %cst_25 = arith.constant dense<0.000000e+00> : vector<32x128xf32>
    %26 = tpu.matmul %11, %25, %cst_25 {dimension_numbers = #tpu.dot_dimension_numbers<[1], [0], [0], [1], [0, 0, 1, 1], [], []>} : vector<32x128xbf16>, vector<128x128xbf16>, vector<32x128xf32> -> vector<32x128xf32>
    %27 = vector.broadcast %2 : vector<1x128xf32> to vector<32x128xf32>
    %28 = arith.addf %26, %27 : vector<32x128xf32>
    %29 = arith.truncf %28 : vector<32x128xf32> to vector<32x128xbf16>
    %30 = vector.shape_cast %17 : vector<32x128xbf16> to vector<4x8x128xbf16>
    %31 = vector.shape_cast %23 : vector<32x128xbf16> to vector<4x8x128xbf16>
    %32 = vector.shape_cast %29 : vector<32x128xbf16> to vector<4x8x128xbf16>
    %33 = vector.extract_strided_slice %30 {offsets = [0, 0, 0], sizes = [4, 8, 32], strides = [1, 1, 1]} : vector<4x8x128xbf16> to vector<4x8x32xbf16>
    %34 = vector.extract_strided_slice %31 {offsets = [0, 0, 0], sizes = [4, 8, 32], strides = [1, 1, 1]} : vector<4x8x128xbf16> to vector<4x8x32xbf16>
    %35 = vector.extract_strided_slice %32 {offsets = [0, 0, 0], sizes = [4, 8, 32], strides = [1, 1, 1]} : vector<4x8x128xbf16> to vector<4x8x32xbf16>
    %cst_26 = arith.constant dense<0.000000e+00> : vector<4x8x8xf32>
    %36 = tpu.matmul %33, %34, %cst_26 {dimension_numbers = #tpu.dot_dimension_numbers<[2], [2], [1], [1], [0, 0, 0, 1, 1, 1], [0], [0]>} : vector<4x8x32xbf16>, vector<4x8x32xbf16>, vector<4x8x8xf32> -> vector<4x8x8xf32>
    %cst_27 = arith.constant dense<0xFF800000> : vector<4x8xf32>
    %37 = vector.multi_reduction <maximumf>, %36, %cst_27 [2] : vector<4x8x8xf32> to vector<4x8xf32>
    %38 = vector.shape_cast %37 : vector<4x8xf32> to vector<4x8x1xf32>
    %39 = vector.broadcast %38 : vector<4x8x1xf32> to vector<4x8x8xf32>
    %40 = arith.subf %36, %39 : vector<4x8x8xf32>
    %41 = math.exp %40 : vector<4x8x8xf32>
    %cst_28 = arith.constant dense<0.000000e+00> : vector<4x8xf32>
    %42 = vector.multi_reduction <add>, %41, %cst_28 [2] : vector<4x8x8xf32> to vector<4x8xf32>
    %43 = vector.shape_cast %42 : vector<4x8xf32> to vector<4x8x1xf32>
    %44 = arith.truncf %41 : vector<4x8x8xf32> to vector<4x8x8xbf16>
    %cst_29 = arith.constant dense<0.000000e+00> : vector<4x8x32xf32>
    %45 = tpu.matmul %44, %35, %cst_29 {dimension_numbers = #tpu.dot_dimension_numbers<[2], [1], [1], [2], [0, 0, 0, 1, 1, 2], [0], [0]>} : vector<4x8x8xbf16>, vector<4x8x32xbf16>, vector<4x8x32xf32> -> vector<4x8x32xf32>
    %46 = tpu.reciprocal %43 {approx = true} : vector<4x8x1xf32> -> vector<4x8x1xf32>
    %47 = vector.broadcast %46 : vector<4x8x1xf32> to vector<4x8x32xf32>
    %48 = arith.mulf %45, %47 : vector<4x8x32xf32>
    %49 = vector.extract_strided_slice %30 {offsets = [0, 0, 32], sizes = [4, 8, 32], strides = [1, 1, 1]} : vector<4x8x128xbf16> to vector<4x8x32xbf16>
    %50 = vector.extract_strided_slice %31 {offsets = [0, 0, 32], sizes = [4, 8, 32], strides = [1, 1, 1]} : vector<4x8x128xbf16> to vector<4x8x32xbf16>
    %51 = vector.extract_strided_slice %32 {offsets = [0, 0, 32], sizes = [4, 8, 32], strides = [1, 1, 1]} : vector<4x8x128xbf16> to vector<4x8x32xbf16>
    %cst_30 = arith.constant dense<0.000000e+00> : vector<4x8x8xf32>
    %52 = tpu.matmul %49, %50, %cst_30 {dimension_numbers = #tpu.dot_dimension_numbers<[2], [2], [1], [1], [0, 0, 0, 1, 1, 1], [0], [0]>} : vector<4x8x32xbf16>, vector<4x8x32xbf16>, vector<4x8x8xf32> -> vector<4x8x8xf32>
    %cst_31 = arith.constant dense<0xFF800000> : vector<4x8xf32>
    %53 = vector.multi_reduction <maximumf>, %52, %cst_31 [2] : vector<4x8x8xf32> to vector<4x8xf32>
    %54 = vector.shape_cast %53 : vector<4x8xf32> to vector<4x8x1xf32>
    %55 = vector.broadcast %54 : vector<4x8x1xf32> to vector<4x8x8xf32>
    %56 = arith.subf %52, %55 : vector<4x8x8xf32>
    %57 = math.exp %56 : vector<4x8x8xf32>
    %cst_32 = arith.constant dense<0.000000e+00> : vector<4x8xf32>
    %58 = vector.multi_reduction <add>, %57, %cst_32 [2] : vector<4x8x8xf32> to vector<4x8xf32>
    %59 = vector.shape_cast %58 : vector<4x8xf32> to vector<4x8x1xf32>
    %60 = arith.truncf %57 : vector<4x8x8xf32> to vector<4x8x8xbf16>
    %cst_33 = arith.constant dense<0.000000e+00> : vector<4x8x32xf32>
    %61 = tpu.matmul %60, %51, %cst_33 {dimension_numbers = #tpu.dot_dimension_numbers<[2], [1], [1], [2], [0, 0, 0, 1, 1, 2], [0], [0]>} : vector<4x8x8xbf16>, vector<4x8x32xbf16>, vector<4x8x32xf32> -> vector<4x8x32xf32>
    %62 = tpu.reciprocal %59 {approx = true} : vector<4x8x1xf32> -> vector<4x8x1xf32>
    %63 = vector.broadcast %62 : vector<4x8x1xf32> to vector<4x8x32xf32>
    %64 = arith.mulf %61, %63 : vector<4x8x32xf32>
    %65 = vector.extract_strided_slice %30 {offsets = [0, 0, 64], sizes = [4, 8, 32], strides = [1, 1, 1]} : vector<4x8x128xbf16> to vector<4x8x32xbf16>
    %66 = vector.extract_strided_slice %31 {offsets = [0, 0, 64], sizes = [4, 8, 32], strides = [1, 1, 1]} : vector<4x8x128xbf16> to vector<4x8x32xbf16>
    %67 = vector.extract_strided_slice %32 {offsets = [0, 0, 64], sizes = [4, 8, 32], strides = [1, 1, 1]} : vector<4x8x128xbf16> to vector<4x8x32xbf16>
    %cst_34 = arith.constant dense<0.000000e+00> : vector<4x8x8xf32>
    %68 = tpu.matmul %65, %66, %cst_34 {dimension_numbers = #tpu.dot_dimension_numbers<[2], [2], [1], [1], [0, 0, 0, 1, 1, 1], [0], [0]>} : vector<4x8x32xbf16>, vector<4x8x32xbf16>, vector<4x8x8xf32> -> vector<4x8x8xf32>
    %cst_35 = arith.constant dense<0xFF800000> : vector<4x8xf32>
    %69 = vector.multi_reduction <maximumf>, %68, %cst_35 [2] : vector<4x8x8xf32> to vector<4x8xf32>
    %70 = vector.shape_cast %69 : vector<4x8xf32> to vector<4x8x1xf32>
    %71 = vector.broadcast %70 : vector<4x8x1xf32> to vector<4x8x8xf32>
    %72 = arith.subf %68, %71 : vector<4x8x8xf32>
    %73 = math.exp %72 : vector<4x8x8xf32>
    %cst_36 = arith.constant dense<0.000000e+00> : vector<4x8xf32>
    %74 = vector.multi_reduction <add>, %73, %cst_36 [2] : vector<4x8x8xf32> to vector<4x8xf32>
    %75 = vector.shape_cast %74 : vector<4x8xf32> to vector<4x8x1xf32>
    %76 = arith.truncf %73 : vector<4x8x8xf32> to vector<4x8x8xbf16>
    %cst_37 = arith.constant dense<0.000000e+00> : vector<4x8x32xf32>
    %77 = tpu.matmul %76, %67, %cst_37 {dimension_numbers = #tpu.dot_dimension_numbers<[2], [1], [1], [2], [0, 0, 0, 1, 1, 2], [0], [0]>} : vector<4x8x8xbf16>, vector<4x8x32xbf16>, vector<4x8x32xf32> -> vector<4x8x32xf32>
    %78 = tpu.reciprocal %75 {approx = true} : vector<4x8x1xf32> -> vector<4x8x1xf32>
    %79 = vector.broadcast %78 : vector<4x8x1xf32> to vector<4x8x32xf32>
    %80 = arith.mulf %77, %79 : vector<4x8x32xf32>
    %81 = vector.extract_strided_slice %30 {offsets = [0, 0, 96], sizes = [4, 8, 32], strides = [1, 1, 1]} : vector<4x8x128xbf16> to vector<4x8x32xbf16>
    %82 = vector.extract_strided_slice %31 {offsets = [0, 0, 96], sizes = [4, 8, 32], strides = [1, 1, 1]} : vector<4x8x128xbf16> to vector<4x8x32xbf16>
    %83 = vector.extract_strided_slice %32 {offsets = [0, 0, 96], sizes = [4, 8, 32], strides = [1, 1, 1]} : vector<4x8x128xbf16> to vector<4x8x32xbf16>
    %cst_38 = arith.constant dense<0.000000e+00> : vector<4x8x8xf32>
    %84 = tpu.matmul %81, %82, %cst_38 {dimension_numbers = #tpu.dot_dimension_numbers<[2], [2], [1], [1], [0, 0, 0, 1, 1, 1], [0], [0]>} : vector<4x8x32xbf16>, vector<4x8x32xbf16>, vector<4x8x8xf32> -> vector<4x8x8xf32>
    %cst_39 = arith.constant dense<0xFF800000> : vector<4x8xf32>
    %85 = vector.multi_reduction <maximumf>, %84, %cst_39 [2] : vector<4x8x8xf32> to vector<4x8xf32>
    %86 = vector.shape_cast %85 : vector<4x8xf32> to vector<4x8x1xf32>
    %87 = vector.broadcast %86 : vector<4x8x1xf32> to vector<4x8x8xf32>
    %88 = arith.subf %84, %87 : vector<4x8x8xf32>
    %89 = math.exp %88 : vector<4x8x8xf32>
    %cst_40 = arith.constant dense<0.000000e+00> : vector<4x8xf32>
    %90 = vector.multi_reduction <add>, %89, %cst_40 [2] : vector<4x8x8xf32> to vector<4x8xf32>
    %91 = vector.shape_cast %90 : vector<4x8xf32> to vector<4x8x1xf32>
    %92 = arith.truncf %89 : vector<4x8x8xf32> to vector<4x8x8xbf16>
    %cst_41 = arith.constant dense<0.000000e+00> : vector<4x8x32xf32>
    %93 = tpu.matmul %92, %83, %cst_41 {dimension_numbers = #tpu.dot_dimension_numbers<[2], [1], [1], [2], [0, 0, 0, 1, 1, 2], [0], [0]>} : vector<4x8x8xbf16>, vector<4x8x32xbf16>, vector<4x8x32xf32> -> vector<4x8x32xf32>
    %94 = tpu.reciprocal %91 {approx = true} : vector<4x8x1xf32> -> vector<4x8x1xf32>
    %95 = vector.broadcast %94 : vector<4x8x1xf32> to vector<4x8x32xf32>
    %96 = arith.mulf %93, %95 : vector<4x8x32xf32>
    %97 = tpu.concatenate %48, %64, %80, %96 in 2 : vector<4x8x32xf32>, vector<4x8x32xf32>, vector<4x8x32xf32>, vector<4x8x32xf32> -> vector<4x8x128xf32>
    %98 = vector.shape_cast %97 : vector<4x8x128xf32> to vector<32x128xf32>
    %99 = arith.truncf %98 : vector<32x128xf32> to vector<32x128xbf16>
    %c0_42 = arith.constant 0 : index
    %c0_43 = arith.constant 0 : index
    %100 = vector.load %arg5[%c0_42, %c0_43] : memref<128x128xbf16, #tpu.memory_space<vmem>>, vector<128x128xbf16>
    %cst_44 = arith.constant dense<0.000000e+00> : vector<32x128xf32>
    %101 = tpu.matmul %99, %100, %cst_44 {dimension_numbers = #tpu.dot_dimension_numbers<[1], [0], [0], [1], [0, 0, 1, 1], [], []>} : vector<32x128xbf16>, vector<128x128xbf16>, vector<32x128xf32> -> vector<32x128xf32>
    %102 = vector.broadcast %3 : vector<1x128xf32> to vector<32x128xf32>
    %103 = arith.addf %101, %102 : vector<32x128xf32>
    %c0_45 = arith.constant 0 : index
    %c0_46 = arith.constant 0 : index
    %104 = vector.load %arg1[%c0_45, %c0_46] : memref<32x128xbf16, #tpu.memory_space<vmem>>, vector<32x128xbf16>
    %105 = arith.extf %104 : vector<32x128xbf16> to vector<32x128xf32>
    %106 = arith.addf %105, %103 : vector<32x128xf32>
    %cst_47 = arith.constant dense<0.000000e+00> : vector<32xf32>
    %107 = vector.multi_reduction <add>, %106, %cst_47 [1] : vector<32x128xf32> to vector<32xf32>
    %108 = vector.shape_cast %107 : vector<32xf32> to vector<32x1xf32>
    %cst_48 = arith.constant 1.280000e+02 : f32
    %109 = vector.broadcast %cst_48 : f32 to vector<32x1xf32>
    %110 = arith.divf %108, %109 : vector<32x1xf32>
    %111 = vector.broadcast %110 : vector<32x1xf32> to vector<32x128xf32>
    %112 = arith.subf %106, %111 : vector<32x128xf32>
    %113 = arith.mulf %112, %112 : vector<32x128xf32>
    %cst_49 = arith.constant dense<0.000000e+00> : vector<32xf32>
    %114 = vector.multi_reduction <add>, %113, %cst_49 [1] : vector<32x128xf32> to vector<32xf32>
    %115 = vector.shape_cast %114 : vector<32xf32> to vector<32x1xf32>
    %cst_50 = arith.constant 1.280000e+02 : f32
    %116 = vector.broadcast %cst_50 : f32 to vector<32x1xf32>
    %117 = arith.divf %115, %116 : vector<32x1xf32>
    %cst_51 = arith.constant 9.99999974E-6 : f32
    %118 = vector.broadcast %cst_51 : f32 to vector<32x1xf32>
    %119 = arith.addf %117, %118 : vector<32x1xf32>
    %120 = math.rsqrt %119 : vector<32x1xf32>
    %121 = vector.broadcast %120 : vector<32x1xf32> to vector<32x128xf32>
    %122 = arith.mulf %112, %121 : vector<32x128xf32>
    %123 = vector.broadcast %4 : vector<1x128xf32> to vector<32x128xf32>
    %124 = arith.mulf %122, %123 : vector<32x128xf32>
    %125 = vector.broadcast %5 : vector<1x128xf32> to vector<32x128xf32>
    %126 = arith.addf %124, %125 : vector<32x128xf32>
    %127 = arith.truncf %126 : vector<32x128xf32> to vector<32x128xbf16>
    %c0_52 = arith.constant 0 : index
    %c0_53 = arith.constant 0 : index
    %128 = vector.load %arg6[%c0_52, %c0_53] : memref<128x256xbf16, #tpu.memory_space<vmem>>, vector<128x256xbf16>
    %cst_54 = arith.constant dense<0.000000e+00> : vector<32x256xf32>
    %129 = tpu.matmul %127, %128, %cst_54 {dimension_numbers = #tpu.dot_dimension_numbers<[1], [0], [0], [1], [0, 0, 1, 1], [], []>} : vector<32x128xbf16>, vector<128x256xbf16>, vector<32x256xf32> -> vector<32x256xf32>
    %c0_55 = arith.constant 0 : index
    %c0_56 = arith.constant 0 : index
    %130 = vector.load %arg7[%c0_55, %c0_56] : memref<1x256xf32, #tpu.memory_space<vmem>>, vector<1x256xf32>
    %131 = vector.broadcast %130 : vector<1x256xf32> to vector<32x256xf32>
    %132 = arith.addf %129, %131 : vector<32x256xf32>
    %cst_57 = arith.constant 0.000000e+00 : f32
    %133 = vector.broadcast %cst_57 : f32 to vector<32x256xf32>
    %134 = arith.maximumf %132, %133 : vector<32x256xf32>
    %135 = arith.truncf %134 : vector<32x256xf32> to vector<32x256xbf16>
    %c0_58 = arith.constant 0 : index
    %c0_59 = arith.constant 0 : index
    %136 = vector.load %arg8[%c0_58, %c0_59] : memref<256x128xbf16, #tpu.memory_space<vmem>>, vector<256x128xbf16>
    %cst_60 = arith.constant dense<0.000000e+00> : vector<32x128xf32>
    %137 = tpu.matmul %135, %136, %cst_60 {dimension_numbers = #tpu.dot_dimension_numbers<[1], [0], [0], [1], [0, 0, 1, 1], [], []>} : vector<32x256xbf16>, vector<256x128xbf16>, vector<32x128xf32> -> vector<32x128xf32>
    %138 = vector.broadcast %6 : vector<1x128xf32> to vector<32x128xf32>
    %139 = arith.addf %137, %138 : vector<32x128xf32>
    %140 = arith.addf %126, %139 : vector<32x128xf32>
    %cst_61 = arith.constant dense<0.000000e+00> : vector<32xf32>
    %141 = vector.multi_reduction <add>, %140, %cst_61 [1] : vector<32x128xf32> to vector<32xf32>
    %142 = vector.shape_cast %141 : vector<32xf32> to vector<32x1xf32>
    %cst_62 = arith.constant 1.280000e+02 : f32
    %143 = vector.broadcast %cst_62 : f32 to vector<32x1xf32>
    %144 = arith.divf %142, %143 : vector<32x1xf32>
    %145 = vector.broadcast %144 : vector<32x1xf32> to vector<32x128xf32>
    %146 = arith.subf %140, %145 : vector<32x128xf32>
    %147 = arith.mulf %146, %146 : vector<32x128xf32>
    %cst_63 = arith.constant dense<0.000000e+00> : vector<32xf32>
    %148 = vector.multi_reduction <add>, %147, %cst_63 [1] : vector<32x128xf32> to vector<32xf32>
    %149 = vector.shape_cast %148 : vector<32xf32> to vector<32x1xf32>
    %cst_64 = arith.constant 1.280000e+02 : f32
    %150 = vector.broadcast %cst_64 : f32 to vector<32x1xf32>
    %151 = arith.divf %149, %150 : vector<32x1xf32>
    %cst_65 = arith.constant 9.99999974E-6 : f32
    %152 = vector.broadcast %cst_65 : f32 to vector<32x1xf32>
    %153 = arith.addf %151, %152 : vector<32x1xf32>
    %154 = math.rsqrt %153 : vector<32x1xf32>
    %155 = vector.broadcast %154 : vector<32x1xf32> to vector<32x128xf32>
    %156 = arith.mulf %146, %155 : vector<32x128xf32>
    %157 = vector.broadcast %7 : vector<1x128xf32> to vector<32x128xf32>
    %158 = arith.mulf %156, %157 : vector<32x128xf32>
    %159 = vector.broadcast %8 : vector<1x128xf32> to vector<32x128xf32>
    %160 = arith.addf %158, %159 : vector<32x128xf32>
    %161 = arith.truncf %160 : vector<32x128xf32> to vector<32x128xbf16>
    %c0_66 = arith.constant 0 : index
    %c0_67 = arith.constant 0 : index
    %162 = vector.load %arg10[%c0_66, %c0_67] : memref<32x128xbf16, #tpu.memory_space<vmem>>, vector<32x128xbf16>
    tpu.vector_store %arg10[%c0_66, %c0_67], %161 {strides = array<i32>} : memref<32x128xbf16, #tpu.memory_space<vmem>>, vector<32x128xbf16>,
    return
  }
  func.func @transform_0(%arg0: i32) -> (i32, i32) {
    %c0_i32 = arith.constant 0 : i32
    %c0_i32_0 = arith.constant 0 : i32
    return %arg0, %c0_i32 : i32, i32
  }
  func.func @transform_1(%arg0: i32) -> (i32, i32) {
    %c0_i32 = arith.constant 0 : i32
    %c0_i32_0 = arith.constant 0 : i32
    return %arg0, %c0_i32 : i32, i32
  }
  func.func @transform_2(%arg0: i32) -> (i32, i32) {
    %c0_i32 = arith.constant 0 : i32
    %c0_i32_0 = arith.constant 0 : i32
    return %arg0, %c0_i32 : i32, i32
  }
  func.func @transform_3(%arg0: i32) -> (i32, i32, i32) {
    %c0_i32 = arith.constant 0 : i32
    %c0_i32_0 = arith.constant 0 : i32
    %c0_i32_1 = arith.constant 0 : i32
    %c0_i32_2 = arith.constant 0 : i32
    return %c0_i32, %c0_i32_0, %c0_i32_1 : i32, i32, i32
  }
  func.func @transform_4(%arg0: i32) -> (i32, i32) {
    %c0_i32 = arith.constant 0 : i32
    %c0_i32_0 = arith.constant 0 : i32
    %c0_i32_1 = arith.constant 0 : i32
    return %c0_i32, %c0_i32_0 : i32, i32
  }
  func.func @transform_5(%arg0: i32) -> (i32, i32) {
    %c0_i32 = arith.constant 0 : i32
    %c0_i32_0 = arith.constant 0 : i32
    %c0_i32_1 = arith.constant 0 : i32
    return %c0_i32, %c0_i32_0 : i32, i32
  }
  func.func @transform_6(%arg0: i32) -> (i32, i32) {
    %c0_i32 = arith.constant 0 : i32
    %c0_i32_0 = arith.constant 0 : i32
    %c0_i32_1 = arith.constant 0 : i32
    return %c0_i32, %c0_i32_0 : i32, i32
  }
  func.func @transform_7(%arg0: i32) -> (i32, i32) {
    %c0_i32 = arith.constant 0 : i32
    %c0_i32_0 = arith.constant 0 : i32
    %c0_i32_1 = arith.constant 0 : i32
    return %c0_i32, %c0_i32_0 : i32, i32
  }
  func.func @transform_8(%arg0: i32) -> (i32, i32) {
    %c0_i32 = arith.constant 0 : i32
    %c0_i32_0 = arith.constant 0 : i32
    %c0_i32_1 = arith.constant 0 : i32
    return %c0_i32, %c0_i32_0 : i32, i32
  }
  func.func @transform_9(%arg0: i32) -> (i32, i32) {
    %c0_i32 = arith.constant 0 : i32
    %c0_i32_0 = arith.constant 0 : i32
    return %arg0, %c0_i32 : i32, i32
  }
}

</mosaic_0001>

<bundles_post_ra>
// kernel: tpu_custom_call.1
= control target key start
LH: loop header
LB: loop body
LE: loop exit
PB: predicated region body
PF: predicated region fallthrough
CT: control target
= control target key end

     0   :  { %14 = vsyncpa [#allocation3], 0  ;;  %s3341_s0 = inlined_call_operand.hbm [shape: bf16[32,128], index: 0, kind: input, shape index: {}]   ;;  %s3342_s1 = inlined_call_operand.hbm [shape: bf16[32,128], index: 1, kind: input, shape index: {}]   ;;  %s3343_s2 = inlined_call_operand.hbm [shape: bf16[32,128], index: 2, kind: input, shape index: {}]   ;;  %s3344_s3 = inlined_call_operand.hbm [shape: bf16[3,128,128], index: 3, kind: input, shape index: {}]   ;;  %s3345_s4 = inlined_call_operand.hbm [shape: bf16[128,128], index: 4, kind: input, shape index: {}]   ;;  %s3346_s5 = inlined_call_operand.hbm [shape: bf16[128,256], index: 5, kind: input, shape index: {}]   ;;  %s3347_s6 = inlined_call_operand.vmem [shape: f32[1,256], index: 6, kind: input, shape index: {}]   ;;  %s3348_s7 = inlined_call_operand.hbm [shape: bf16[256,128], index: 7, kind: input, shape index: {}]   ;;  %s3349_s8 = inlined_call_operand.hbm [shape: f32[9,128], index: 8, kind: input, shape index: {}]   ;;  %s3350_s9 = inlined_call_operand.hbm [shape: bf16[32,128], index: 9, kind: output, shape index: {}]  }
   0x1   :  { %15 = vsyncpa [#allocation6], 0 }
   0x2   :  { %16 = vsyncpa [#allocation9], 0 }
   0x3   :  { %17 = vsyncpa [#allocation12], 0 }
   0x4   :  { %18 = vsyncpa [#allocation15], 0 }
   0x5   :  { %19 = vsyncpa [#allocation4], 0  ;;  %s37_s11 = sshll.u32 %s3342_s1, 4  ;;  %s2850_s12 = smov [#allocation5]   ;;  %s38_s11 = int_to_ptr.hbm [resolvable:$true] %s37_s11 }
   0x6   :  { %s39_s13 = sshll.u32 %s2850_s12, 4  ;;  %s63_s16 = sshll.u32 %s3344_s3, 4  ;;  %s40_s13 = int_to_ptr.vmem [resolvable:$true] %s39_s13  ;;  %s64_s16 = int_to_ptr.hbm [resolvable:$true] %s63_s16 }
   0x7   :  { %s2851_s17 = smov 64   ;;  %s2852_s18 = smov 4  }
   0x8   :  { %45 = dma.hbm_to_vmem [thread:$0]  %s38_s11, 256, %s40_s13, [#allocation6], %s2851_s17, %s2851_s17, %s2852_s18  }
   0x9   :  { %s2853_s19 = smov [#allocation8]   ;;  %s89_s1 = sshll.u32 %s3346_s5, 4  ;;  %s90_s1 = int_to_ptr.hbm [resolvable:$true] %s89_s1 }
   0xa   :  { %s65_s20 = sshll.u32 %s2853_s19, 4  ;;  %s2854_s3 = smov [#allocation11]   ;;  %s66_s20 = int_to_ptr.vmem [resolvable:$true] %s65_s20 }
   0xb   :  { %71 = dma.hbm_to_vmem [thread:$0]  %s64_s16, 3072, %s66_s20, [#allocation9], %s2851_s17, %s2851_s17, %s2852_s18  }
   0xc   :  { %s91_s23 = sshll.u32 %s2854_s3, 4  ;;  %s24_s26 = sshll.u32 %s3341_s0, 4  ;;  %s92_s23 = int_to_ptr.vmem [resolvable:$true] %s91_s23  ;;  %s25_s26 = int_to_ptr.hbm [resolvable:$true] %s24_s26 }
   0xd   :  { %s2855_s27 = smov 128   ;;  %s2856_s28 = smov 8  }
   0xe   :  { %97 = dma.hbm_to_vmem [thread:$0]  %s90_s1, 2048, %s92_s23, [#allocation12], %s2855_s27, %s2855_s27, %s2856_s28  }
   0xf   :  { %s2857_s5 = smov [#allocation2]   ;;  %s50_s11 = sshll.u32 %s3343_s2, 4  ;;  %s51_s11 = int_to_ptr.hbm [resolvable:$true] %s50_s11 }
  0x10   :  { %s26_s29 = sshll.u32 %s2857_s5, 4  ;;  %s76_s13 = sshll.u32 %s3345_s4, 4  ;;  %s27_s29 = int_to_ptr.vmem [resolvable:$true] %s26_s29  ;;  %s77_s13 = int_to_ptr.hbm [resolvable:$true] %s76_s13 }
  0x11   :  { %32 = dma.hbm_to_vmem [thread:$0]  %s25_s26, 256, %s27_s29, [#allocation3], %s2851_s17, %s2851_s17, %s2852_s18  }
  0x12   :  { %s2858_s14 = smov [#allocation7]   ;;  %s2859_s16 = smov [#allocation10]  }
  0x13   :  { %s52_s15 = sshll.u32 %s2858_s14, 4  ;;  %s78_s2 = sshll.u32 %s2859_s16, 4  ;;  %s53_s15 = int_to_ptr.vmem [resolvable:$true] %s52_s15  ;;  %s79_s2 = int_to_ptr.vmem [resolvable:$true] %s78_s2 }
  0x14   :  { %58 = dma.hbm_to_vmem [thread:$0]  %s51_s11, 256, %s53_s15, [#allocation6], %s2851_s17, %s2851_s17, %s2852_s18  }
  0x15   :  { %s104_s21 = sshll.u32 %s3348_s7, 4  ;;  %s117_s1 = sshll.u32 %s3349_s8, 4  ;;  %s105_s21 = int_to_ptr.hbm [resolvable:$true] %s104_s21  ;;  %s118_s1 = int_to_ptr.hbm [resolvable:$true] %s117_s1 }
  0x16   :  { %84 = dma.hbm_to_vmem [thread:$0]  %s77_s13, 1024, %s79_s2, [#allocation9], %s2851_s17, %s2851_s17, %s2852_s18  }
  0x17   :  { %s2860_s3 = smov [#allocation13]   ;;  %s2861_s24 = smov [#allocation14]  }
  0x18   :  { %s106_s23 = sshll.u32 %s2860_s3, 4  ;;  %s119_s7 = sshll.u32 %s2861_s24, 4  ;;  %s107_s23 = int_to_ptr.vmem [resolvable:$true] %s106_s23  ;;  %s120_s7 = int_to_ptr.vmem [resolvable:$true] %s119_s7 }
  0x19   :  { %112 = dma.hbm_to_vmem [thread:$0]  %s105_s21, 2048, %s107_s23, [#allocation12], %s2851_s17, %s2851_s17, %s2852_s18  }
  0x1a   :  { %125 = dma.hbm_to_vmem [thread:$0]  %s118_s1, 256, %s120_s7, [#allocation15], %s2855_s27, %s2855_s27, %s2856_s28  }
  0x1b   :  { %2838 = dma.done.wait [#allocation3], 256  }
  0x1c   :  { %2839 = vsyncadd [#allocation3], 4294967040 }
  0x1d   :  { %2840 = dma.done.wait [#allocation6], 512  }
  0x1e   :  { %2841 = vsyncadd [#allocation6], 4294966784 }
  0x1f   :  { %2842 = dma.done.wait [#allocation9], 4096  }
  0x20   :  { %2843 = vsyncadd [#allocation9], 4294963200 }
  0x21   :  { %2844 = dma.done.wait [#allocation12], 4096  }
  0x22   :  { %2845 = vsyncadd [#allocation12], 4294963200 }
  0x23   :  { %2846 = dma.done.wait [#allocation15], 256  }
  0x24   :  { %2847 = vsyncadd [#allocation15], 4294967040  ;;  %v2417_v0 = vld [vmem:[#allocation8 + $0x38] sm:$0xff]  ;;  %v2416_v2 = vld [vmem:[#allocation8 + $0x30] sm:$0xff]  ;;  %vm482_vm0 = vcmask 261120   ;;  %s2862_s8 = smov 96  }
  0x25   :  { %v2425_v1 = vld [vmem:[#allocation8 + $0x78] sm:$0xff]  ;;  %257 = vmatpush.bf16.msra.mxu0 %v2417_v0  ;;  %v2424_v3 = vld [vmem:[#allocation8 + $0x70] sm:$0xff]  ;;  %v2415_v4 = vld [vmem:[#allocation8 + $0x28] sm:$0xff]  ;;  %vm603_vm1 = vcmask 1043456   ;;  %vm559_vm2 = vcmask 64512   ;;  %s2863_s25 = smov 32  }
  0x26   :  { %358 = vmatpush.bf16.msra.mxu1 %v2425_v1  ;;  %v2423_v5 = vld [vmem:[#allocation8 + $0x68] sm:$0xff]  ;;  %v2414_v6 = vld [vmem:[#allocation8 + $0x20] sm:$0xff]  ;;  %v2413_v8 = vld [vmem:[#allocation8 + $0x18] sm:$0xff]  ;;  %vm1445_vm3 = vcmask 523264   ;;  %vm1450_vm4 = vcmask 785408   ;;  %s2075_s30 = sshll.u32 %s3350_s9, 4  ;;  %s2076_s30 = int_to_ptr.hbm [resolvable:$true] %s2075_s30 }
  0x27   :  { %v2422_v7 = vld [vmem:[#allocation8 + $0x60] sm:$0xff]  ;;  %v2421_v9 = vld [vmem:[#allocation8 + $0x58] sm:$0xff]  ;;  %v2412_v11 = vld [vmem:[#allocation8 + $0x10] sm:$0xff] }
  0x28   :  { %v2433_v10 = vld [vmem:[#allocation8 + $0xb8] sm:$0xff]  ;;  %v2420_v12 = vld [vmem:[#allocation8 + $0x50] sm:$0xff]  ;;  %v2411_v14 = vld [vmem:[#allocation8 + $0x8] sm:$0xff] }
  0x29   :  { %258 = vmatpush.bf16.msra.mxu0 %v2416_v2  ;;  %459 = vmatpush.bf16.msra.mxu2 %v2433_v10  ;;  %v2432_v13 = vld [vmem:[#allocation8 + $0xb0] sm:$0xff]  ;;  %v2419_v15 = vld [vmem:[#allocation8 + $0x48] sm:$0xff]  ;;  %v2410_v17 = vld [vmem:[#allocation8] sm:$0xff] }
  0x2a   :  { %359 = vmatpush.bf16.msra.mxu1 %v2424_v3  ;;  %v2431_v16 = vld [vmem:[#allocation8 + $0xa8] sm:$0xff]  ;;  %v2418_v18 = vld [vmem:[#allocation8 + $0x40] sm:$0xff]  ;;  %v2404_v20 = vld [vmem:[#allocation2] sm:$0xff] }
  0x2b   :  { %v2430_v19 = vld [vmem:[#allocation8 + $0xa0] sm:$0xff]  ;;  %v2429_v22 = vld [vmem:[#allocation8 + $0x98] sm:$0xff]  ;;  %v2428_v23 = vld [vmem:[#allocation8 + $0x90] sm:$0xff] }
  0x2c   :  { %v2406_v21 = vld [vmem:[#allocation5] sm:$0xff]  ;;  %v2427_v24 = vld [vmem:[#allocation8 + $0x88] sm:$0xff]  ;;  %v2405_v27 = vld [vmem:[#allocation2 + $0x8] sm:$0xff] }
  0x2d   :  { %259 = vmatpush.bf16.msra.mxu0 %v2415_v4  ;;  %460 = vmatpush.bf16.msra.mxu2 %v2432_v13  ;;  %v2426_v25 = vld [vmem:[#allocation8 + $0x80] sm:$0xff]  ;;  %v2407_v26 = vld [vmem:[#allocation5 + $0x8] sm:$0xff]  ;;  %v2408_v28 = vld [vmem:[#allocation7] sm:$0xff] }
  0x2e   :  { %360 = vmatpush.bf16.msra.mxu1 %v2423_v5  ;;  %v2409_v29 = vld [vmem:[#allocation7 + $0x8] sm:$0xff]  ;;  %v2532_v30 = vld [vmem:[#allocation14 + $0x1] ss:$0 sm:$0xff]  ;;  %v2531_v32 = vld [vmem:[#allocation14] ss:$0 sm:$0xff] }
  0x31   :  { %260 = vmatpush.bf16.msra.mxu0 %v2414_v6  ;;  %461 = vmatpush.bf16.msra.mxu2 %v2431_v16  ;;  %v2533_v6 = vld [vmem:[#allocation14 + $0x2] ss:$0 sm:$0xff] }
  0x32   :  { %361 = vmatpush.bf16.msra.mxu1 %v2422_v7 }
  0x35   :  { %261 = vmatpush.bf16.msra.mxu0 %v2413_v8  ;;  %462 = vmatpush.bf16.msra.mxu2 %v2430_v19 }
  0x36   :  { %362 = vmatpush.bf16.msra.mxu1 %v2421_v9 }
  0x39   :  { %262 = vmatpush.bf16.msra.mxu0 %v2412_v11  ;;  %463 = vmatpush.bf16.msra.mxu2 %v2429_v22 }
  0x3a   :  { %363 = vmatpush.bf16.msra.mxu1 %v2420_v12 }
  0x3d   :  { %263 = vmatpush.bf16.msra.mxu0 %v2411_v14  ;;  %464 = vmatpush.bf16.msra.mxu2 %v2428_v23 }
  0x3e   :  { %364 = vmatpush.bf16.msra.mxu1 %v2419_v15 }
  0x41   :  { %264 = vmatpush.bf16.msra.mxu0 %v2410_v17  ;;  %465 = vmatpush.bf16.msra.mxu2 %v2427_v24 }
  0x42   :  { %365 = vmatpush.bf16.msra.mxu1 %v2418_v18 }
  0x44   :  { %265 = vmatmul.bf16.vlgmr.msra.gmra.mxu0 %v2404_v20 }
  0x45   :  { %366 = vmatmul.bf16.vlgmr.msra.gmra.mxu1 %v2406_v21  ;;  %466 = vmatpush.bf16.msra.mxu2 %v2426_v25 }
  0x48   :  { %467 = vmatmul.bf16.vlgmr.msra.gmra.mxu2 %v2408_v28 }
  0x54   :  { %270 = vmatmul.bf16.gmra.mxu0 %v2405_v27 }
  0x55   :  { %371 = vmatmul.bf16.gmra.mxu1 %v2407_v26 }
  0x58   :  { %472 = vmatmul.bf16.gmra.mxu2 %v2409_v29 }
  0xc1   :  { %v266_v34 = vpop.f32.mrf.mxu0 }
  0xc2   :  { %v367_v31 = vpop.f32.mrf.mxu1  ;;  %v267_v36 = vadd.f32 %v2531_v32, %v266_v34 }
  0xc3   :  { %v368_v33 = vadd.f32 %v2532_v30, %v367_v31 }
  0xc4   :  { %v276_v41 = vpack.c.bf16 %v267_v36, %v267_v36 }
  0xc5   :  { %v377_v35 = vpack.c.bf16 %v368_v33, %v368_v33 }
  0xc6   :  { %v686_v9 = vunpack.c.l.b16 %v276_v41 }
  0xc7   :  { %v691_v37 = vunpack.c.l.b16 %v377_v35  ;;  %v487_v38 = vsel %vm482_vm0, %v377_v35, 0 }
  0xc8   :  { %496 = vmatpush.bf16.xpose.msra.mxu3 %v487_v38  ;;  %v2999_v11 = vpack.c.b16 %v686_v9, %v686_v9 }
  0xc9   :  { %v2965_v39 = vpack.c.b16 %v691_v37, %v691_v37  ;;  %v268_v44 = vpop.f32.mrf.mxu0 }
  0xca   :  { %v369_v40 = vpop.f32.mrf.mxu1  ;;  %v269_v52 = vadd.f32 %v2531_v32, %v268_v44 }
  0xcb   :  { %v370_v42 = vadd.f32 %v2532_v30, %v369_v40  ;;  %693 = vrot.lane.b32.xlu0 %v2965_v39, %s2862_s8  ;;  %v468_v7 = vpop.f32.mrf.mxu2 }
  0xcc   :  { %v2979_v57 = vpack.c.bf16 %v269_v52, %v269_v52  ;;  %v469_v8 = vadd.f32 %v2533_v6, %v468_v7 }
  0xcd   :  { %v2969_v43 = vpack.c.bf16 %v370_v42, %v370_v42 }
  0xce   :  { %v2997_v10 = vpack.c.bf16 %v469_v8, %v469_v8 }
  0xcf   :  { %2212 = vmatmul.msk.bf16.vlgmr.msra.gmra.mxu3 %vm482_vm0, %v276_v41  ;;  %v506_v45 = vsel %vm482_vm0, %v2969_v43, 0 }
  0xd0   :  { %515 = vmatpush.bf16.xpose.msrb.mxu3 %v506_v45  ;;  %v842_v12 = vunpack.c.l.b16 %v2997_v10  ;;  %v715_v45 = vunpack.c.l.b16 %v2979_v57 }
  0xd1   :  { %v271_v49 = vpop.f32.mrf.mxu0 }
  0xd2   :  { %v372_v46 = vpop.f32.mrf.mxu1  ;;  %v272_v56 = vadd.f32 %v2531_v32, %v271_v49  ;;  %v3004_v13 = vpack.c.b16 %v842_v12, %v842_v12 }
  0xd3   :  { %v373_v47 = vadd.f32 %v2532_v30, %v372_v46  ;;  %v470_v14 = vpop.f32.mrf.mxu2 }
  0xd4   :  { %v278_v61 = vpack.c.bf16 %v272_v56, %v272_v56  ;;  %v471_v49 = vadd.f32 %v2533_v6, %v470_v14 }
  0xd5   :  { %v379_v48 = vpack.c.bf16 %v373_v47, %v373_v47 }
  0xd6   :  { %v744_v0 = vunpack.c.l.b16 %v278_v61  ;;  %v479_v52 = vpack.c.bf16 %v471_v49, %v471_v49 }
  0xd7   :  { %v525_v50 = vsel %vm482_vm0, %v379_v48, 0  ;;  %v749_v51 = vunpack.c.l.b16 %v379_v48  ;;  %v3029_v48 = vpack.c.b16 %v715_v45, %v715_v45 }
  0xd8   :  { %534 = vmatpush.bf16.xpose.msra.mxu3 %v525_v50  ;;  %v2988_v2 = vpack.c.b16 %v744_v0, %v744_v0 }
  0xd9   :  { %v2975_v53 = vpack.c.b16 %v749_v51, %v749_v51  ;;  %v273_v62 = vpop.f32.mrf.mxu0 }
  0xda   :  { %v374_v54 = vpop.f32.mrf.mxu1  ;;  %v274_v1 = vadd.f32 %v2531_v32, %v273_v62 }
  0xdb   :  { %v375_v55 = vadd.f32 %v2532_v30, %v374_v54  ;;  %751 = vrot.lane.b32.xlu2 %v2975_v53, %s2862_s8  ;;  %v473_v15 = vpop.f32.mrf.mxu2 }
  0xdc   :  { %v279_v3 = vpack.c.bf16 %v274_v1, %v274_v1  ;;  %v474_v16 = vadd.f32 %v2533_v6, %v473_v15 }
  0xdd   :  { %v380_v58 = vpack.c.bf16 %v375_v55, %v375_v55  ;;  %v866_v55 = vunpack.c.l.b16 %v479_v52 }
  0xde   :  { %v773_v4 = vunpack.c.l.b16 %v279_v3  ;;  %v480_v19 = vpack.c.bf16 %v474_v16, %v474_v16 }
  0xdf   :  { %v544_v59 = vsel %vm482_vm0, %v380_v58, 0  ;;  %v778_v60 = vunpack.c.l.b16 %v380_v58  ;;  %2213 = vmatmul.msk.bf16.vlgmr.msrb.gmra.mxu3 %vm482_vm0, %v2979_v57  ;;  %v3037_v56 = vpack.c.b16 %v866_v55, %v866_v55  ;;  %v720_v57 = vunpack.c.l.b16 %v2969_v43 }
  0xe0   :  { %553 = vmatpush.bf16.xpose.msrb.mxu3 %v544_v59  ;;  %v2992_v5 = vpack.c.b16 %v773_v4, %v773_v4  ;;  %v643_v22 = vsel %vm603_vm1, %v480_v19, 0  ;;  %v890_v59 = vunpack.c.l.b16 %v480_v19  ;;  %v605_v43 = vsel %vm603_vm1, %v2997_v10, 0 }
  0xe1   :  { %v2984_v63 = vpack.c.b16 %v778_v60, %v778_v60  ;;  %652 = vmatpush.bf16.msrb.mxu2 %v643_v22  ;;  %v3042_v58 = vpack.c.b16 %v720_v57, %v720_v57  ;;  %614 = vmatpush.bf16.msrb.mxu1 %v605_v43 }
  0xe2   :  { %v3048_v60 = vpack.c.b16 %v890_v59, %v890_v59 }
  0xe3   :  { %780 = vrot.lane.b32.xlu2 %v2984_v63, %s2862_s8  ;;  %v475_v17 = vpop.f32.mrf.mxu2 }
  0xe4   :  { %v476_v18 = vadd.f32 %v2533_v6, %v475_v17 }
  0xe6   :  { %v481_v20 = vpack.c.bf16 %v476_v18, %v476_v18 }
  0xe8   :  { %v662_v21 = vsel %vm603_vm1, %v481_v20, 0  ;;  %v914_v50 = vunpack.c.l.b16 %v481_v20 }
  0xea   :  { %v3033_v54 = vpack.c.b16 %v914_v50, %v914_v50 }
  0xeb   :  { %746 = vrot.lane.b32.xlu2 %v2988_v2, %s2862_s8 }
  0xef   :  { %2214 = vmatmul.msk.bf16.vlgmr.msra.gmra.mxu3 %vm482_vm0, %v278_v61  ;;  %v624_v61 = vsel %vm603_vm1, %v479_v52, 0 }
  0xf0   :  { %671 = vmatpush.bf16.msra.mxu3 %v662_v21  ;;  %633 = vmatpush.bf16.msra.mxu1 %v624_v61 }
  0xf3   :  { %775 = vrot.lane.b32.xlu2 %v2992_v5, %s2862_s8 }
  0xfb   :  { %688 = vrot.lane.b32.xlu2 %v2999_v11, %s2862_s8 }
  0xff   :  { %2215 = vmatmul.msk.bf16.vlgmr.msrb.gmra.mxu3 %vm482_vm0, %v279_v3 }
 0x103   :  { %844 = vrot.lane.b32.xlu2 %v3004_v13, %s2862_s8 }
 0x10b   :  { %1016 = vrot.lane.b32.xlu2 %v2984_v63, %s2851_s17 }
 0x113   :  { %991 = vrot.lane.b32.xlu2 %v2988_v2, %s2851_s17 }
 0x135   :  { %v752_v23 = vpop.permute.xlu2 %751 }
 0x136   :  { %v757_v24 = vsel %vm482_vm0, %v752_v23, 0 }
 0x137   :  { %766 = vmatpush.bf16.xpose.msra.mxu2 %v757_v24 }
 0x13d   :  { %v781_v25 = vpop.permute.xlu2 %780  ;;  %v694_v26 = vpop.permute.xlu0 %693 }
 0x13e   :  { %v786_v27 = vsel %vm482_vm0, %v781_v25, 0  ;;  %v699_v28 = vsel %vm482_vm0, %v694_v26, 0 }
 0x13f   :  { %708 = vmatpush.bf16.xpose.msrb.mxu0 %v699_v28  ;;  %795 = vmatpush.bf16.xpose.msrb.mxu3 %v786_v27 }
 0x145   :  { %v3018_v29 = vpop.permute.xlu2 %746 }
 0x14d   :  { %v3020_v30 = vpop.permute.xlu2 %775 }
 0x152   :  { %v498_v31 = vpop.f32.mrf.mxu3 }
 0x153   :  { %v560_v32 = vsel %vm559_vm2, %v498_v31, -inf }
 0x154   :  { %561 = vmax.xlane.f32.xlu0 %v560_v32 }
 0x155   :  { %v689_v33 = vpop.permute.xlu2 %688 }
 0x156   :  { %2220 = vmatmul.msk.bf16.vlgmr.msrb.gmra.mxu0 %vm482_vm0, %v689_v33 }
 0x15a   :  { %v500_v34 = vpop.f32.mrf.mxu3 }
 0x15d   :  { %v845_v35 = vpop.permute.xlu2 %844 }
 0x15e   :  { %v850_v36 = vsel %vm603_vm1, %v845_v35, 0 }
 0x15f   :  { %859 = vmatpush.bf16.msra.mxu0 %v850_v36 }
 0x162   :  { %v517_v37 = vpop.f32.mrf.mxu3 }
 0x163   :  { %v563_v38 = vsel %vm559_vm2, %v517_v37, -inf }
 0x164   :  { %564 = vmax.xlane.f32.xlu1 %v563_v38 }
 0x165   :  { %v1017_v33 = vpop.permute.xlu2 %1016 }
 0x166   :  { %v1022_v36 = vsel %vm482_vm0, %v1017_v33, 0 }
 0x16a   :  { %v519_v40 = vpop.f32.mrf.mxu3 }
 0x172   :  { %v536_v41 = vpop.f32.mrf.mxu3 }
 0x173   :  { %v566_v42 = vsel %vm559_vm2, %v536_v41, -inf }
 0x174   :  { %567 = vmax.xlane.f32.xlu0 %v566_v42 }
 0x17a   :  { %v538_v44 = vpop.f32.mrf.mxu3 }
 0x182   :  { %v555_v46 = vpop.f32.mrf.mxu3 }
 0x183   :  { %v569_v47 = vsel %vm559_vm2, %v555_v46, -inf }
 0x184   :  { %570 = vmax.xlane.f32.xlu1 %v569_v47 }
 0x188   :  { %717 = vrot.lane.b32.xlu0 %v3029_v48, %s2862_s8 }
 0x18a   :  { %v557_v51 = vpop.f32.mrf.mxu3 }
 0x190   :  { %916 = vrot.lane.b32.xlu0 %v3033_v54, %s2862_s8 }
 0x198   :  { %868 = vrot.lane.b32.xlu0 %v3037_v56, %s2862_s8 }
 0x19d   :  { %722 = vrot.lane.b32.xlu1 %v3042_v58, %s2862_s8 }
 0x1a0   :  { %947 = vrot.lane.b32.xlu0 %v2965_v39, %s2851_s17 }
 0x1a5   :  { %892 = vrot.lane.b32.xlu1 %v3048_v60, %s2862_s8 }
 0x1ad   :  { %993 = vrot.lane.b32.xlu1 %v2975_v53, %s2851_s17 }
 0x1b5   :  { %970 = vrot.lane.b32.xlu1 %v3042_v58, %s2851_s17 }
 0x1c7   :  { %v562_v62 = vpop.xlane.xlu0 %561 }
 0x1c8   :  { %v572_v0 = vsub.f32 %v498_v31, %v562_v62 }
 0x1ca   :  { %v576_v1 = vmul.f32 1.442695, %v572_v0 }
 0x1cc   :  { %2540 = vpow2.f32 %v576_v1 }
 0x1d2   :  { %v3059_v3 = vpop.eup %2540 }
 0x1d3   :  { %v710_v4 = vpop.f32.mrf.mxu0  ;;  %v596_v6 = vpack.c.bf16 %v3059_v3, %v3059_v3 }
 0x1d4   :  { %v801_v7 = vsel %vm559_vm2, %v710_v4, -inf }
 0x1d5   :  { %2216 = vmatmul.msk.bf16.vlgmr.msrb.gmra.mxu1 %vm559_vm2, %v596_v6  ;;  %802 = vmax.xlane.f32.xlu0 %v801_v7 }
 0x1d7   :  { %v565_v8 = vpop.xlane.xlu1 %564 }
 0x1d8   :  { %v573_v9 = vsub.f32 %v517_v37, %v565_v8 }
 0x1da   :  { %v578_v10 = vmul.f32 1.442695, %v573_v9 }
 0x1db   :  { %v712_v12 = vpop.f32.mrf.mxu0 }
 0x1dc   :  { %2542 = vpow2.f32 %v578_v10 }
 0x1e2   :  { %v3065_v14 = vpop.eup %2542 }
 0x1e3   :  { %v597_v15 = vpack.c.bf16 %v3065_v14, %v3065_v14 }
 0x1e5   :  { %2217 = vmatmul.msk.bf16.vlgmr.msra.gmra.mxu1 %vm559_vm2, %v597_v15  ;;  %v992_v15 = vpop.permute.xlu2 %991 }
 0x1e7   :  { %v568_v16 = vpop.xlane.xlu0 %567 }
 0x1e8   :  { %v574_v17 = vsub.f32 %v536_v41, %v568_v16 }
 0x1e9   :  { %1014 = vrot.lane.b32.xlu0 %v2992_v5, %s2851_s17 }
 0x1ea   :  { %v580_v18 = vmul.f32 1.442695, %v574_v17 }
 0x1ec   :  { %2544 = vpow2.f32 %v580_v18 }
 0x1f1   :  { %1119 = vrot.lane.b32.xlu0 %v3048_v60, %s2851_s17 }
 0x1f2   :  { %v3074_v19 = vpop.eup %2544 }
 0x1f3   :  { %v598_v20 = vpack.c.bf16 %v3074_v19, %v3074_v19 }
 0x1f5   :  { %2218 = vmatmul.msk.bf16.vlgmr.msrb.gmra.mxu2 %vm559_vm2, %v598_v20 }
 0x1f7   :  { %v571_v21 = vpop.xlane.xlu1 %570 }
 0x1f8   :  { %v575_v22 = vsub.f32 %v555_v46, %v571_v21 }
 0x1f9   :  { %1171 = vrot.lane.b32.xlu0 %v2965_v39, %s2863_s25 }
 0x1fa   :  { %v582_v23 = vmul.f32 1.442695, %v575_v22  ;;  %v718_v24 = vpop.permute.xlu0 %717 }
 0x1fc   :  { %2546 = vpow2.f32 %v582_v23 }
 0x201   :  { %1240 = vrot.lane.b32.xlu0 %v2984_v63, %s2863_s25 }
 0x202   :  { %v3083_v25 = vpop.eup %2546  ;;  %v917_v26 = vpop.permute.xlu0 %916 }
 0x203   :  { %v599_v27 = vpack.c.bf16 %v3083_v25, %v3083_v25  ;;  %v922_v28 = vsel %vm603_vm1, %v917_v26, 0 }
 0x205   :  { %2219 = vmatmul.msk.bf16.vlgmr.msra.gmra.mxu3 %vm559_vm2, %v599_v27  ;;  %2222 = vmatmul.msk.bf16.vlgmr.msra.gmra.mxu2 %vm482_vm0, %v3018_v29 }
 0x206   :  { %931 = vmatpush.bf16.msra.mxu3 %v922_v28 }
 0x20a   :  { %v869_v39 = vpop.permute.xlu0 %868 }
 0x20b   :  { %v874_v31 = vsel %vm603_vm1, %v869_v39, 0 }
 0x20f   :  { %v723_v32 = vpop.permute.xlu1 %722 }
 0x210   :  { %v728_v63 = vsel %vm482_vm0, %v723_v32, 0 }
 0x211   :  { %737 = vmatpush.bf16.xpose.msrb.mxu1 %v728_v63 }
 0x212   :  { %v948_v34 = vpop.permute.xlu0 %947 }
 0x213   :  { %v953_v35 = vsel %vm482_vm0, %v948_v34, 0 }
 0x214   :  { %962 = vmatpush.bf16.xpose.msrb.mxu0 %v953_v35 }
 0x215   :  { %2223 = vmatmul.msk.bf16.vlgmr.msrb.gmra.mxu3 %vm482_vm0, %v3020_v30 }
 0x216   :  { %1031 = vmatpush.bf16.xpose.msrb.mxu3 %v1022_v36 }
 0x217   :  { %v893_v29 = vpop.permute.xlu1 %892 }
 0x218   :  { %v898_v37 = vsel %vm603_vm1, %v893_v29, 0  ;;  %2221 = vmatmul.msk.bf16.vlgmr.msrb.gmra.mxu1 %vm482_vm0, %v718_v24 }
 0x219   :  { %883 = vmatpush.bf16.msra.mxu1 %v874_v31  ;;  %907 = vmatpush.bf16.msrb.mxu2 %v898_v37 }
 0x21f   :  { %v994_v38 = vpop.permute.xlu1 %993 }
 0x220   :  { %v999_v40 = vsel %vm482_vm0, %v994_v38, 0 }
 0x221   :  { %1008 = vmatpush.bf16.xpose.msra.mxu2 %v999_v40 }
 0x227   :  { %v971_v41 = vpop.permute.xlu1 %970 }
 0x228   :  { %v976_v42 = vsel %vm482_vm0, %v971_v41, 0 }
 0x229   :  { %985 = vmatpush.bf16.xpose.msrb.mxu1 %v976_v42 }
 0x248   :  { %v803_v44 = vpop.xlane.xlu0 %802 }
 0x249   :  { %v813_v45 = vsub.f32 %v710_v4, %v803_v44 }
 0x24b   :  { %v817_v46 = vmul.f32 1.442695, %v813_v45 }
 0x24d   :  { %2548 = vpow2.f32 %v817_v46 }
 0x252   :  { %v3101_v30 = vpop.f32.mrf.mxu1 }
 0x253   :  { %v3103_v47 = vpop.eup %2548 }
 0x254   :  { %v837_v49 = vpack.c.bf16 %v3103_v47, %v3103_v47 }
 0x256   :  { %2224 = vmatmul.msk.bf16.vlgmr.msra.gmra.mxu0 %vm559_vm2, %v837_v49 }
 0x25a   :  { %v618_v50 = vpop.f32.mrf.mxu1 }
 0x262   :  { %v3108_v51 = vpop.f32.mrf.mxu1 }
 0x26a   :  { %v637_v52 = vpop.f32.mrf.mxu1 }
 0x278   :  { %v3110_v55 = vpop.f32.mrf.mxu2 }
 0x280   :  { %v656_v57 = vpop.f32.mrf.mxu2 }
 0x288   :  { %v3112_v59 = vpop.f32.mrf.mxu3  ;;  %v768_v61 = vpop.f32.mrf.mxu2 }
 0x289   :  { %v807_v8 = vsel %vm559_vm2, %v768_v61, -inf }
 0x290   :  { %v675_v43 = vpop.f32.mrf.mxu3  ;;  %v770_v62 = vpop.f32.mrf.mxu2 }
 0x295   :  { %v739_v0 = vpop.f32.mrf.mxu1 }
 0x296   :  { %v804_v1 = vsel %vm559_vm2, %v739_v0, -inf }
 0x297   :  { %805 = vmax.xlane.f32.xlu2 %v804_v1 }
 0x298   :  { %v797_v4 = vpop.f32.mrf.mxu3 }
 0x299   :  { %v810_v6 = vsel %vm559_vm2, %v797_v4, -inf }
 0x29a   :  { %811 = vmax.xlane.f32.xlu1 %v810_v6 }
 0x29d   :  { %v741_v7 = vpop.f32.mrf.mxu1 }
 0x29f   :  { %808 = vmax.xlane.f32.xlu2 %v807_v8 }
 0x2a0   :  { %v799_v9 = vpop.f32.mrf.mxu3 }
 0x2b3   :  { %945 = vrot.lane.b32.xlu1 %v2999_v11, %s2851_s17 }
 0x2b7   :  { %968 = vrot.lane.b32.xlu2 %v3029_v48, %s2851_s17 }
 0x2bb   :  { %1077 = vrot.lane.b32.xlu1 %v3004_v13, %s2851_s17 }
 0x2bf   :  { %1098 = vrot.lane.b32.xlu2 %v3037_v56, %s2851_s17 }
 0x2c3   :  { %1140 = vrot.lane.b32.xlu1 %v3033_v54, %s2851_s17 }
 0x2c7   :  { %1194 = vrot.lane.b32.xlu2 %v3042_v58, %s2863_s25 }
 0x2cb   :  { %1217 = vrot.lane.b32.xlu1 %v2975_v53, %s2863_s25  ;;  %v1015_v53 = vpop.permute.xlu0 %1014 }
 0x2cf   :  { %1169 = vrot.lane.b32.xlu2 %v2999_v11, %s2863_s25 }
 0x2d3   :  { %v3133_v10 = vpop.f32.mrf.mxu0  ;;  %v1120_v63 = vpop.permute.xlu0 %1119 }
 0x2d4   :  { %v1125_v33 = vsel %vm603_vm1, %v1120_v63, 0 }
 0x2db   :  { %v863_v12 = vpop.f32.mrf.mxu0  ;;  %v1172_v29 = vpop.permute.xlu0 %1171 }
 0x2dc   :  { %v1177_v42 = vsel %vm482_vm0, %v1172_v29, 0 }
 0x2e3   :  { %v1241_v44 = vpop.permute.xlu0 %1240 }
 0x2e4   :  { %v1246_v49 = vsel %vm482_vm0, %v1241_v44, 0 }
 0x30a   :  { %v806_v16 = vpop.xlane.xlu2 %805 }
 0x30b   :  { %v814_v17 = vsub.f32 %v739_v0, %v806_v16 }
 0x30d   :  { %v819_v18 = vmul.f32 1.442695, %v814_v17  ;;  %v812_v20 = vpop.xlane.xlu1 %811 }
 0x30e   :  { %v816_v21 = vsub.f32 %v797_v4, %v812_v20 }
 0x30f   :  { %2550 = vpow2.f32 %v819_v18 }
 0x310   :  { %v823_v22 = vmul.f32 1.442695, %v816_v21 }
 0x312   :  { %2552 = vpow2.f32 %v823_v22  ;;  %v809_v23 = vpop.xlane.xlu2 %808 }
 0x313   :  { %v815_v58 = vsub.f32 %v768_v61, %v809_v23 }
 0x315   :  { %v3135_v24 = vpop.eup %2550  ;;  %v821_v26 = vmul.f32 1.442695, %v815_v58 }
 0x316   :  { %v838_v11 = vpack.c.bf16 %v3135_v24, %v3135_v24 }
 0x317   :  { %2554 = vpow2.f32 %v821_v26 }
 0x318   :  { %v3139_v27 = vpop.eup %2552  ;;  %2225 = vmatmul.msk.bf16.vlgmr.msra.gmra.mxu1 %vm559_vm2, %v838_v11 }
 0x319   :  { %v840_v28 = vpack.c.bf16 %v3139_v27, %v3139_v27 }
 0x31a   :  { %v969_v39 = vpop.permute.xlu2 %968 }
 0x31b   :  { %2227 = vmatmul.msk.bf16.vlgmr.msra.gmra.mxu3 %vm559_vm2, %v840_v28 }
 0x31d   :  { %v3145_v31 = vpop.eup %2554 }
 0x31e   :  { %v839_v32 = vpack.c.bf16 %v3145_v31, %v3145_v31 }
 0x320   :  { %2226 = vmatmul.msk.bf16.vlgmr.msrb.gmra.mxu2 %vm559_vm2, %v839_v32 }
 0x321   :  { %1134 = vmatpush.bf16.msrb.mxu2 %v1125_v33 }
 0x322   :  { %v1099_v34 = vpop.permute.xlu2 %1098 }
 0x323   :  { %v1104_v35 = vsel %vm603_vm1, %v1099_v34, 0 }
 0x324   :  { %1113 = vmatpush.bf16.msra.mxu1 %v1104_v35 }
 0x325   :  { %v946_v36 = vpop.permute.xlu1 %945 }
 0x326   :  { %2228 = vmatmul.msk.bf16.vlgmr.msrb.gmra.mxu0 %vm482_vm0, %v946_v36 }
 0x328   :  { %2229 = vmatmul.msk.bf16.vlgmr.msrb.gmra.mxu1 %vm482_vm0, %v969_v39 }
 0x32a   :  { %v1195_v37 = vpop.permute.xlu2 %1194 }
 0x32b   :  { %v1200_v38 = vsel %vm482_vm0, %v1195_v37, 0  ;;  %2231 = vmatmul.msk.bf16.vlgmr.msrb.gmra.mxu3 %vm482_vm0, %v1015_v53 }
 0x32c   :  { %1209 = vmatpush.bf16.xpose.msrb.mxu1 %v1200_v38 }
 0x32d   :  { %v1078_v40 = vpop.permute.xlu1 %1077 }
 0x32e   :  { %v1083_v41 = vsel %vm603_vm1, %v1078_v40, 0 }
 0x32f   :  { %1092 = vmatpush.bf16.msra.mxu0 %v1083_v41 }
 0x330   :  { %2230 = vmatmul.msk.bf16.vlgmr.msra.gmra.mxu2 %vm482_vm0, %v992_v15 }
 0x332   :  { %v1170_v28 = vpop.permute.xlu2 %1169 }
 0x333   :  { %1186 = vmatpush.bf16.xpose.msrb.mxu0 %v1177_v42 }
 0x335   :  { %v1141_v45 = vpop.permute.xlu1 %1140 }
 0x336   :  { %v1146_v46 = vsel %vm603_vm1, %v1141_v45, 0 }
 0x337   :  { %1155 = vmatpush.bf16.msra.mxu3 %v1146_v46 }
 0x33b   :  { %1255 = vmatpush.bf16.xpose.msrb.mxu3 %v1246_v49 }
 0x33d   :  { %v1218_v50 = vpop.permute.xlu1 %1217 }
 0x33e   :  { %v1223_v52 = vsel %vm482_vm0, %v1218_v50, 0 }
 0x33f   :  { %1232 = vmatpush.bf16.xpose.msra.mxu2 %v1223_v52 }
 0x395   :  { %v3162_v57 = vpop.f32.mrf.mxu1 }
 0x39d   :  { %v887_v61 = vpop.f32.mrf.mxu1 }
 0x39e   :  { %v3164_v43 = vpop.f32.mrf.mxu3 }
 0x3a3   :  { %v3166_v62 = vpop.f32.mrf.mxu2  ;;  %v964_v0 = vpop.f32.mrf.mxu0 }
 0x3a4   :  { %v1037_v1 = vsel %vm559_vm2, %v964_v0, -inf }
 0x3a5   :  { %v987_v4 = vpop.f32.mrf.mxu1  ;;  %1038 = vmax.xlane.f32.xlu0 %v1037_v1 }
 0x3a6   :  { %v935_v6 = vpop.f32.mrf.mxu3  ;;  %v1040_v7 = vsel %vm559_vm2, %v987_v4, -inf }
 0x3a7   :  { %1041 = vmax.xlane.f32.xlu1 %v1040_v7 }
 0x3ab   :  { %v911_v8 = vpop.f32.mrf.mxu2  ;;  %v966_v9 = vpop.f32.mrf.mxu0 }
 0x3ad   :  { %v989_v12 = vpop.f32.mrf.mxu1 }
 0x3ae   :  { %v1033_v15 = vpop.f32.mrf.mxu3 }
 0x3af   :  { %v1046_v16 = vsel %vm559_vm2, %v1033_v15, -inf }
 0x3b0   :  { %1047 = vmax.xlane.f32.xlu0 %v1046_v16 }
 0x3b3   :  { %v1010_v17 = vpop.f32.mrf.mxu2 }
 0x3b4   :  { %v1043_v18 = vsel %vm559_vm2, %v1010_v17, -inf }
 0x3b5   :  { %1044 = vmax.xlane.f32.xlu2 %v1043_v18 }
 0x3b6   :  { %v1035_v20 = vpop.f32.mrf.mxu3 }
 0x3bb   :  { %v1012_v21 = vpop.f32.mrf.mxu2 }
 0x3c0   :  { %1192 = vrot.lane.b32.xlu1 %v3029_v48, %s2863_s25 }
 0x3c4   :  { %1215 = vrot.lane.b32.xlu0 %v2988_v2, %s2863_s25 }
 0x3cc   :  { %1301 = vrot.lane.b32.xlu0 %v3004_v13, %s2863_s25 }
 0x3cd   :  { %1238 = vrot.lane.b32.xlu2 %v2992_v5, %s2863_s25 }
 0x418   :  { %v1039_v22 = vpop.xlane.xlu0 %1038 }
 0x419   :  { %v1049_v23 = vsub.f32 %v964_v0, %v1039_v22 }
 0x41a   :  { %v1042_v58 = vpop.xlane.xlu1 %1041 }
 0x41b   :  { %v1053_v53 = vmul.f32 1.442695, %v1049_v23  ;;  %v1050_v26 = vsub.f32 %v987_v4, %v1042_v58  ;;  %v828_v23 = vsel %vm559_vm2, %v3135_v24, 0.0 }
 0x41d   :  { %2556 = vpow2.f32 %v1053_v53  ;;  %v1055_v11 = vmul.f32 1.442695, %v1050_v26  ;;  %v825_v53 = vsel %vm559_vm2, %v3103_v47, 0.0  ;;  %v584_v47 = vsel %vm559_vm2, %v3059_v3, 0.0 }
 0x41f   :  { %2558 = vpow2.f32 %v1055_v11 }
 0x423   :  { %v2557_v39 = vpop.eup %2556  ;;  %v1048_v48 = vpop.xlane.xlu0 %1047 }
 0x424   :  { %v1073_v32 = vpack.c.bf16 %v2557_v39, %v2557_v39  ;;  %v1052_v63 = vsub.f32 %v1033_v15, %v1048_v48  ;;  %v1061_v58 = vsel %vm559_vm2, %v2557_v39, 0.0 }
 0x425   :  { %v2559_v2 = vpop.eup %2558 }
 0x426   :  { %v1074_v33 = vpack.c.bf16 %v2559_v2, %v2559_v2  ;;  %v1059_v34 = vmul.f32 1.442695, %v1052_v63  ;;  %2232 = vmatmul.msk.bf16.vlgmr.msra.gmra.mxu0 %vm559_vm2, %v1073_v32  ;;  %v1064_v26 = vsel %vm559_vm2, %v2559_v2, 0.0 }
 0x428   :  { %2560 = vpow2.f32 %v1059_v34  ;;  %v1045_v5 = vpop.xlane.xlu2 %1044  ;;  %2233 = vmatmul.msk.bf16.vlgmr.msra.gmra.mxu1 %vm559_vm2, %v1074_v33 }
 0x429   :  { %v1051_v13 = vsub.f32 %v1010_v17, %v1045_v5 }
 0x42b   :  { %v1057_v35 = vmul.f32 1.442695, %v1051_v13  ;;  %v834_v13 = vsel %vm559_vm2, %v3139_v27, 0.0 }
 0x42d   :  { %2562 = vpow2.f32 %v1057_v35 }
 0x42e   :  { %v2561_v36 = vpop.eup %2560 }
 0x42f   :  { %v1076_v29 = vpack.c.bf16 %v2561_v36, %v2561_v36 }
 0x430   :  { %v1239_v45 = vpop.permute.xlu2 %1238 }
 0x431   :  { %2235 = vmatmul.msk.bf16.vlgmr.msra.gmra.mxu3 %vm559_vm2, %v1076_v29 }
 0x432   :  { %v1193_v41 = vpop.permute.xlu1 %1192 }
 0x433   :  { %v2563_v37 = vpop.eup %2562 }
 0x434   :  { %v1075_v38 = vpack.c.bf16 %v2563_v37, %v2563_v37 }
 0x436   :  { %2234 = vmatmul.msk.bf16.vlgmr.msrb.gmra.mxu2 %vm559_vm2, %v1075_v38  ;;  %2236 = vmatmul.msk.bf16.vlgmr.msrb.gmra.mxu0 %vm482_vm0, %v1170_v28  ;;  %v1216_v40 = vpop.permute.xlu0 %1215 }
 0x438   :  { %2237 = vmatmul.msk.bf16.vlgmr.msrb.gmra.mxu1 %vm482_vm0, %v1193_v41 }
 0x43e   :  { %v1302_v42 = vpop.permute.xlu0 %1301 }
 0x43f   :  { %v1307_v44 = vsel %vm603_vm1, %v1302_v42, 0 }
 0x440   :  { %1316 = vmatpush.bf16.msra.mxu0 %v1307_v44 }
 0x441   :  { %2239 = vmatmul.msk.bf16.vlgmr.msrb.gmra.mxu3 %vm482_vm0, %v1239_v45 }
 0x446   :  { %2238 = vmatmul.msk.bf16.vlgmr.msra.gmra.mxu2 %vm482_vm0, %v1216_v40  ;;  %v587_v40 = vsel %vm559_vm2, %v3065_v14, 0.0 }
 0x4a3   :  { %v3189_v46 = vpop.f32.mrf.mxu0 }
 0x4a5   :  { %v3191_v49 = vpop.f32.mrf.mxu1 }
 0x4ab   :  { %v1096_v50 = vpop.f32.mrf.mxu0 }
 0x4ad   :  { %v1117_v52 = vpop.f32.mrf.mxu1 }
 0x4b3   :  { %v1188_v61 = vpop.f32.mrf.mxu0 }
 0x4b4   :  { %v3193_v0 = vpop.f32.mrf.mxu3  ;;  %v1261_v1 = vsel %vm559_vm2, %v1188_v61, -inf }
 0x4b5   :  { %1262 = vmax.xlane.f32.xlu1 %v1261_v1  ;;  %v1211_v4 = vpop.f32.mrf.mxu1 }
 0x4b6   :  { %v1264_v6 = vsel %vm559_vm2, %v1211_v4, -inf }
 0x4b7   :  { %1265 = vmax.xlane.f32.xlu0 %v1264_v6 }
 0x4b9   :  { %v3197_v7 = vpop.f32.mrf.mxu2 }
 0x4bb   :  { %v1190_v8 = vpop.f32.mrf.mxu0 }
 0x4bc   :  { %v1159_v9 = vpop.f32.mrf.mxu3 }
 0x4bd   :  { %v1213_v12 = vpop.f32.mrf.mxu1 }
 0x4c1   :  { %v1138_v15 = vpop.f32.mrf.mxu2 }
 0x4c4   :  { %v1257_v16 = vpop.f32.mrf.mxu3 }
 0x4c5   :  { %v1270_v17 = vsel %vm559_vm2, %v1257_v16, -inf }
 0x4c6   :  { %1271 = vmax.xlane.f32.xlu1 %v1270_v17 }
 0x4c9   :  { %v1234_v18 = vpop.f32.mrf.mxu2 }
 0x4ca   :  { %v1267_v20 = vsel %vm559_vm2, %v1234_v18, -inf }
 0x4cb   :  { %1364 = vrot.lane.b32.xlu0 %v3033_v54, %s2863_s25  ;;  %1268 = vmax.xlane.f32.xlu2 %v1267_v20  ;;  %v1067_v54 = vsel %vm559_vm2, %v2563_v37, 0.0 }
 0x4cc   :  { %v1259_v21 = vpop.f32.mrf.mxu3 }
 0x4d1   :  { %v1236_v22 = vpop.f32.mrf.mxu2 }
 0x4df   :  { %1343 = vrot.lane.b32.xlu1 %v3048_v60, %s2863_s25  ;;  %v1070_v60 = vsel %vm559_vm2, %v2561_v36, 0.0 }
 0x4e3   :  { %1322 = vrot.lane.b32.xlu2 %v3037_v56, %s2863_s25  ;;  %v831_v56 = vsel %vm559_vm2, %v3145_v31, 0.0 }
 0x4f5   :  { %829 = vadd.xlane.f32.xlu0 %v828_v23 }
 0x509   :  { %1062 = vadd.xlane.f32.xlu1 %v1061_v58 }
 0x50c   :  { %826 = vadd.xlane.f32.xlu2 %v825_v53 }
 0x511   :  { %1068 = vadd.xlane.f32.xlu1 %v1067_v54 }
 0x514   :  { %1065 = vadd.xlane.f32.xlu2 %v1064_v26 }
 0x51c   :  { %832 = vadd.xlane.f32.xlu2 %v831_v56 }
 0x524   :  { %1071 = vadd.xlane.f32.xlu2 %v1070_v60  ;;  %v593_v60 = vsel %vm559_vm2, %v3083_v25, 0.0 }
 0x528   :  { %v1263_v24 = vpop.xlane.xlu1 %1262 }
 0x529   :  { %v1273_v11 = vsub.f32 %v1188_v61, %v1263_v24 }
 0x52a   :  { %v1266_v63 = vpop.xlane.xlu0 %1265 }
 0x52b   :  { %v1277_v28 = vmul.f32 1.442695, %v1273_v11  ;;  %v1274_v31 = vsub.f32 %v1211_v4, %v1266_v63 }
 0x52c   :  { %585 = vadd.xlane.f32.xlu2 %v584_v47 }
 0x52d   :  { %2564 = vpow2.f32 %v1277_v28  ;;  %v1279_v34 = vmul.f32 1.442695, %v1274_v31 }
 0x533   :  { %v2565_v39 = vpop.eup %2564 }
 0x534   :  { %v1297_v48 = vpack.c.bf16 %v2565_v39, %v2565_v39  ;;  %v1285_v32 = vsel %vm559_vm2, %v2565_v39, 0.0 }
 0x535   :  { %1286 = vadd.xlane.f32.xlu0 %v1285_v32 }
 0x536   :  { %2240 = vmatmul.msk.bf16.vlgmr.msra.gmra.mxu0 %vm559_vm2, %v1297_v48 }
 0x539   :  { %v1272_v2 = vpop.xlane.xlu1 %1271 }
 0x53a   :  { %v1276_v33 = vsub.f32 %v1257_v16, %v1272_v2 }
 0x53c   :  { %v1283_v5 = vmul.f32 1.442695, %v1276_v33 }
 0x53d   :  { %835 = vadd.xlane.f32.xlu0 %v834_v13  ;;  %v1365_v3 = vpop.permute.xlu0 %1364 }
 0x53e   :  { %2566 = vpow2.f32 %v1283_v5  ;;  %v1370_v35 = vsel %vm603_vm1, %v1365_v3, 0  ;;  %v1269_v36 = vpop.xlane.xlu2 %1268 }
 0x53f   :  { %v1275_v29 = vsub.f32 %v1234_v18, %v1269_v36  ;;  %1379 = vmatpush.bf16.msra.mxu3 %v1370_v35  ;;  %2568 = vpow2.f32 %v1279_v34 }
 0x541   :  { %v1281_v37 = vmul.f32 1.442695, %v1275_v29 }
 0x543   :  { %2570 = vpow2.f32 %v1281_v37 }
 0x544   :  { %v2567_v38 = vpop.eup %2566 }
 0x545   :  { %v1300_v41 = vpack.c.bf16 %v2567_v38, %v2567_v38  ;;  %588 = vadd.xlane.f32.xlu0 %v587_v40  ;;  %v2569_v42 = vpop.eup %2568 }
 0x546   :  { %v1323_v44 = vpop.permute.xlu2 %1322  ;;  %v1298_v50 = vpack.c.bf16 %v2569_v42, %v2569_v42 }
 0x547   :  { %v1328_v27 = vsel %vm603_vm1, %v1323_v44, 0  ;;  %2243 = vmatmul.msk.bf16.vlgmr.msra.gmra.mxu3 %vm559_vm2, %v1300_v41 }
 0x548   :  { %1337 = vmatpush.bf16.msra.mxu1 %v1328_v27 }
 0x549   :  { %v2571_v45 = vpop.eup %2570 }
 0x54a   :  { %v1291_v52 = vsel %vm559_vm2, %v2571_v45, 0.0  ;;  %v1299_v14 = vpack.c.bf16 %v2571_v45, %v2571_v45 }
 0x54b   :  { %2241 = vmatmul.msk.bf16.vlgmr.msra.gmra.mxu1 %vm559_vm2, %v1298_v50 }
 0x54d   :  { %1292 = vadd.xlane.f32.xlu0 %v1291_v52 }
 0x551   :  { %v1344_v61 = vpop.permute.xlu1 %1343 }
 0x552   :  { %v1349_v1 = vsel %vm603_vm1, %v1344_v61, 0 }
 0x553   :  { %1358 = vmatpush.bf16.msrb.mxu2 %v1349_v1 }
 0x556   :  { %2242 = vmatmul.msk.bf16.vlgmr.msrb.gmra.mxu2 %vm559_vm2, %v1299_v14 }
 0x568   :  { %v830_v4 = vpop.xlane.xlu0 %829 }
 0x569   :  { %2572 = vrcp.f32 %v830_v4  ;;  %v2440_v4 = vld [vmem:[#allocation10 + $0x30] sm:$0xff] }
 0x56f   :  { %v2573_v9 = vpop.eup %2572 }
 0x570   :  { %v942_v17 = vmul.f32 %v2573_v9, %v3162_v57  ;;  %v1288_v57 = vsel %vm559_vm2, %v2569_v42, 0.0  ;;  %v2437_v9 = vld [vmem:[#allocation10 + $0x18] sm:$0xff] }
 0x57c   :  { %v1063_v8 = vpop.xlane.xlu1 %1062 }
 0x57f   :  { %v827_v6 = vpop.xlane.xlu2 %826 }
 0x580   :  { %2574 = vrcp.f32 %v827_v6  ;;  %v2439_v6 = vld [vmem:[#allocation10 + $0x28] sm:$0xff] }
 0x581   :  { %2576 = vrcp.f32 %v1063_v8  ;;  %v2438_v8 = vld [vmem:[#allocation10 + $0x20] sm:$0xff] }
 0x584   :  { %v1069_v48 = vpop.xlane.xlu1 %1068 }
 0x586   :  { %v2575_v12 = vpop.eup %2574 }
 0x587   :  { %v1066_v15 = vpop.xlane.xlu2 %1065  ;;  %v941_v16 = vmul.f32 %v2575_v12, %v3133_v10  ;;  %v2577_v20 = vpop.eup %2576  ;;  %v2436_v12 = vld [vmem:[#allocation10 + $0x10] sm:$0xff] }
 0x588   :  { %2578 = vrcp.f32 %v1066_v15  ;;  %v1165_v22 = vmul.f32 %v2577_v20, %v3189_v46  ;;  %v1294_v46 = vsel %vm559_vm2, %v2567_v38, 0.0  ;;  %v2435_v15 = vld [vmem:[#allocation10 + $0x8] sm:$0xff] }
 0x589   :  { %v2501_v18 = vpack.i.bf16 %v942_v17, %v941_v16  ;;  %v590_v16 = vsel %vm559_vm2, %v3074_v19, 0.0  ;;  %v2434_v17 = vld [vmem:[#allocation10] sm:$0xff] }
 0x58b   :  { %2502 = vrot.lane.b32.xlu1 %v2501_v18, %s2863_s25 }
 0x58e   :  { %v2579_v21 = vpop.eup %2578 }
 0x58f   :  { %v1166_v23 = vmul.f32 %v2579_v21, %v3191_v49  ;;  %v833_v49 = vpop.xlane.xlu2 %832 }
 0x591   :  { %v2506_v58 = vpack.i.bf16 %v1166_v23, %v1165_v22 }
 0x593   :  { %2507 = vrot.lane.b32.xlu2 %v2506_v58, %s2851_s17 }
 0x597   :  { %v1072_v47 = vpop.xlane.xlu2 %1071 }
 0x59f   :  { %v586_v18 = vpop.xlane.xlu2 %585 }
 0x5a8   :  { %v1287_v53 = vpop.xlane.xlu0 %1286 }
 0x5a9   :  { %2580 = vrcp.f32 %v1287_v53 }
 0x5af   :  { %v2581_v54 = vpop.eup %2580 }
 0x5b0   :  { %v836_v24 = vpop.xlane.xlu0 %835 }
 0x5b1   :  { %2582 = vrcp.f32 %v836_v24 }
 0x5b2   :  { %2584 = vrcp.f32 %v833_v49 }
 0x5b3   :  { %v1318_v26 = vpop.f32.mrf.mxu0  ;;  %2586 = vrcp.f32 %v1072_v47 }
 0x5b4   :  { %v1389_v10 = vmul.f32 %v2581_v54, %v1318_v26  ;;  %2588 = vrcp.f32 %v1069_v48 }
 0x5b5   :  { %1289 = vadd.xlane.f32.xlu1 %v1288_v57 }
 0x5b7   :  { %v2583_v39 = vpop.eup %2582 }
 0x5b8   :  { %v2585_v32 = vpop.eup %2584  ;;  %v944_v31 = vmul.f32 %v2583_v39, %v3164_v43  ;;  %v589_v37 = vpop.xlane.xlu0 %588 }
 0x5b9   :  { %v943_v2 = vmul.f32 %v2585_v32, %v3166_v62  ;;  %v2587_v34 = vpop.eup %2586  ;;  %2590 = vrcp.f32 %v589_v37 }
 0x5ba   :  { %v2589_v5 = vpop.eup %2588  ;;  %v1168_v13 = vmul.f32 %v2587_v34, %v3193_v0 }
 0x5bb   :  { %v1320_v56 = vpop.f32.mrf.mxu0  ;;  %v2516_v33 = vpack.i.bf16 %v944_v31, %v943_v2  ;;  %v1167_v35 = vmul.f32 %v2589_v5, %v3197_v7 }
 0x5bc   :  { %594 = vadd.xlane.f32.xlu2 %v593_v60 }
 0x5bd   :  { %1295 = vadd.xlane.f32.xlu1 %v1294_v46  ;;  %v2521_v36 = vpack.i.bf16 %v1168_v13, %v1167_v35 }
 0x5bf   :  { %v2591_v43 = vpop.eup %2590 }
 0x5c0   :  { %v682_v62 = vmul.f32 %v2591_v43, %v3108_v51  ;;  %v1293_v44 = vpop.xlane.xlu0 %1292  ;;  %v2441_v51 = vld [vmem:[#allocation10 + $0x38] sm:$0xff] }
 0x5c1   :  { %1522 = vmatpush.bf16.msrb.mxu0 %v2441_v51 }
 0x5c5   :  { %1523 = vmatpush.bf16.msrb.mxu0 %v2440_v4 }
 0x5c8   :  { %v1339_v11 = vpop.f32.mrf.mxu1 }
 0x5c9   :  { %1524 = vmatpush.bf16.msrb.mxu0 %v2439_v6  ;;  %v2864_v6 = vmov 128.0  }
 0x5ca   :  { %v1381_v28 = vpop.f32.mrf.mxu3 }
 0x5cd   :  { %1525 = vmatpush.bf16.msrb.mxu0 %v2438_v8 }
 0x5d0   :  { %v1341_v63 = vpop.f32.mrf.mxu1 }
 0x5d1   :  { %1526 = vmatpush.bf16.msrb.mxu0 %v2437_v9 }
 0x5d2   :  { %v1383_v25 = vpop.f32.mrf.mxu3 }
 0x5d5   :  { %1527 = vmatpush.bf16.msrb.mxu0 %v2436_v12 }
 0x5d6   :  { %2517 = vrot.lane.b32.xlu1 %v2516_v33, %s2863_s25 }
 0x5d9   :  { %v1360_v3 = vpop.f32.mrf.mxu2  ;;  %1528 = vmatpush.bf16.msrb.mxu0 %v2435_v15 }
 0x5dd   :  { %1529 = vmatpush.bf16.msrb.mxu0 %v2434_v17 }
 0x5de   :  { %2522 = vrot.lane.b32.xlu1 %v2521_v36, %s2851_s17 }
 0x5e1   :  { %v1362_v29 = vpop.f32.mrf.mxu2 }
 0x5ed   :  { %v2508_v23 = vpop.permute.xlu2 %2507 }
 0x5ee   :  { %v2510_v53 = vunpack.i.h.bf16 %v2508_v23  ;;  %v2509_v54 = vunpack.i.l.bf16 %v2508_v23 }
 0x5fd   :  { %v2503_v38 = vpop.permute.xlu1 %2502 }
 0x5fe   :  { %v2505_v40 = vunpack.i.h.bf16 %v2503_v38  ;;  %v2504_v21 = vunpack.i.l.bf16 %v2503_v38  ;;  %v2534_v38 = vld [vmem:[#allocation14 + $0x3] ss:$0 sm:$0xff] }
 0x600   :  { %v1442_v41 = vsel %vm482_vm0, %v682_v62, %v2505_v40 }
 0x601   :  { %v1447_v56 = vsel %vm1445_vm3, %v1442_v41, %v2510_v53 }
 0x628   :  { %v1290_v42 = vpop.xlane.xlu1 %1289 }
 0x629   :  { %2592 = vrcp.f32 %v1290_v42 }
 0x62a   :  { %2594 = vrcp.f32 %v1293_v44 }
 0x62f   :  { %v2593_v0 = vpop.eup %2592  ;;  %v595_v24 = vpop.xlane.xlu2 %594 }
 0x630   :  { %v1296_v27 = vpop.xlane.xlu1 %1295  ;;  %v1390_v7 = vmul.f32 %v2593_v0, %v1339_v11  ;;  %v2595_v50 = vpop.eup %2594 }
 0x631   :  { %2596 = vrcp.f32 %v1296_v27  ;;  %v1391_v61 = vmul.f32 %v2595_v50, %v1360_v3 }
 0x632   :  { %v2511_v45 = vpack.i.bf16 %v1390_v7, %v1389_v10  ;;  %2598 = vrcp.f32 %v586_v18  ;;  %v170_v7 = vld [vmem:[#allocation2 + $0x8] sm:$0xff]  }
 0x633   :  { %2600 = vrcp.f32 %v595_v24  ;;  %v2457_v24 = vld [vmem:[#allocation11 + $0x74] sm:$0xf0] }
 0x634   :  { %2512 = vrot.lane.b32.xlu0 %v2511_v45, %s2862_s8  ;;  %v1543_v45 = vunpack.c.l.bf16 %v170_v7 }
 0x637   :  { %v2597_v52 = vpop.eup %2596 }
 0x638   :  { %v1392_v1 = vmul.f32 %v2597_v52, %v1381_v28  ;;  %v2599_v20 = vpop.eup %2598 }
 0x639   :  { %v681_v22 = vmul.f32 %v2599_v20, %v3101_v30  ;;  %v2601_v47 = vpop.eup %2600 }
 0x63a   :  { %v2526_v14 = vpack.i.bf16 %v1392_v1, %v1391_v61  ;;  %v684_v31 = vmul.f32 %v2601_v47, %v3112_v59  ;;  %v168_v59 = vld [vmem:[#allocation2] sm:$0xff]   ;;  %v1544_v1 = vunpack.c.h.bf16 %v170_v7  ;;  %v2336_v47 = vld [vmem:[#allocation11 + $0x78] sm:$0xf0]  ;;  %v2446_v7 = vld [vmem:[#allocation11 + $0x24] sm:$0xf] }
 0x63b   :  { %v1441_v58 = vsel %vm482_vm0, %v681_v22, %v2504_v21  ;;  %v1541_v62 = vunpack.c.l.bf16 %v168_v59  ;;  %v1542_v42 = vunpack.c.h.bf16 %v168_v59  ;;  %v2312_v59 = vld [vmem:[#allocation11 + $0x48] sm:$0xf0] }
 0x63c   :  { %2527 = vrot.lane.b32.xlu1 %v2526_v14, %s2862_s8  ;;  %v1446_v19 = vsel %vm1445_vm3, %v1441_v58, %v2509_v54 }
 0x648   :  { %v2518_v30 = vpop.permute.xlu1 %2517 }
 0x649   :  { %v2520_v48 = vunpack.i.h.bf16 %v2518_v30  ;;  %v2519_v25 = vunpack.i.l.bf16 %v2518_v30  ;;  %v2334_v30 = vld [vmem:[#allocation11 + $0x70] sm:$0xf] }
 0x64b   :  { %v1444_v5 = vsel %vm482_vm0, %v684_v31, %v2520_v48  ;;  %v2326_v48 = vld [vmem:[#allocation11 + $0x60] sm:$0xf] }
 0x650   :  { %v2523_v11 = vpop.permute.xlu1 %2522 }
 0x651   :  { %v2525_v63 = vunpack.i.h.bf16 %v2523_v11  ;;  %v2524_v34 = vunpack.i.l.bf16 %v2523_v11  ;;  %v2456_v11 = vld [vmem:[#allocation11 + $0x74] sm:$0xf] }
 0x653   :  { %v1449_v36 = vsel %vm1445_vm3, %v1444_v5, %v2525_v63  ;;  %v2454_v63 = vld [vmem:[#allocation11 + $0x64] sm:$0xf]  ;;  %v2452_v5 = vld [vmem:[#allocation11 + $0x54] sm:$0xf] }
 0x65e   :  { %591 = vadd.xlane.f32.xlu0 %v590_v16 }
 0x6a6   :  { %v2513_v26 = vpop.permute.xlu0 %2512 }
 0x6a7   :  { %v2515_v10 = vunpack.i.h.bf16 %v2513_v26  ;;  %v2514_v57 = vunpack.i.l.bf16 %v2513_v26 }
 0x6a9   :  { %v1451_v60 = vsel %vm1450_vm4, %v1446_v19, %v2514_v57  ;;  %v1452_v46 = vsel %vm1450_vm4, %v1447_v56, %v2515_v10 }
 0x6aa   :  { %v1455_v49 = vpack.c.bf16 %v1452_v46, %v1451_v60 }
 0x6ac   :  { %1530 = vmatmul.bf16.vlgmr.msrb.gmra.mxu0 %v1455_v49 }
 0x6ae   :  { %v2528_v39 = vpop.permute.xlu1 %2527 }
 0x6af   :  { %v2530_v2 = vunpack.i.h.bf16 %v2528_v39  ;;  %v2529_v13 = vunpack.i.l.bf16 %v2528_v39  ;;  %v2339_v39 = vor.u32 %v2456_v11, %v2336_v47 }
 0x6b1   :  { %v1454_v37 = vsel %vm1450_vm4, %v1449_v36, %v2530_v2  ;;  %1769 = vmatpush.bf16.msra.mxu2 %v2339_v39  ;;  %v2310_v36 = vld [vmem:[#allocation11 + $0x40] sm:$0xf] }
 0x6d1   :  { %v592_v28 = vpop.xlane.xlu0 %591 }
 0x6d2   :  { %2602 = vrcp.f32 %v592_v28  ;;  %v2335_v28 = vor.u32 %v2457_v24, %v2334_v30 }
 0x6d3   :  { %2604 = vrcp.f32 %v2864_v6  ;;  %v2278_v6 = vld [vmem:[#allocation11] sm:$0xf] }
 0x6d4   :  { %1750 = vmatpush.bf16.msrb.mxu1 %v2335_v28 }
 0x6d8   :  { %v2603_v32 = vpop.eup %2602 }
 0x6d9   :  { %v683_v33 = vmul.f32 %v2603_v32, %v3110_v55  ;;  %v2605_v8 = vpop.eup %2604  ;;  %v2455_v32 = vld [vmem:[#allocation11 + $0x64] sm:$0xf0] }
 0x6da   :  { %v1558_v9 = vmul.f32 128.0, %v2605_v8  ;;  %vm1562_vm5 = vweird.f32 %v2605_v8  ;;  %v2327_v31 = vor.u32 %v2455_v32, %v2326_v48 }
 0x6db   :  { %v1443_v3 = vsel %vm482_vm0, %v683_v33, %v2519_v25  ;;  %v2328_v25 = vld [vmem:[#allocation11 + $0x68] sm:$0xf0]  ;;  %v2318_v33 = vld [vmem:[#allocation11 + $0x50] sm:$0xf] }
 0x6dc   :  { %v1448_v35 = vsel %vm1445_vm3, %v1443_v3, %v2524_v34  ;;  %v1559_v12 = vsub.f32 1.0, %v1558_v9  ;;  %v2331_v2 = vor.u32 %v2454_v63, %v2328_v25  ;;  %1751 = vmatpush.bf16.msrb.mxu1 %v2327_v31  ;;  %v2453_v34 = vld [vmem:[#allocation11 + $0x54] sm:$0xf0]  ;;  %v2320_v3 = vld [vmem:[#allocation11 + $0x58] sm:$0xf0] }
 0x6dd   :  { %v1453_v29 = vsel %vm1450_vm4, %v1448_v35, %v2529_v13  ;;  %v2319_v13 = vor.u32 %v2453_v34, %v2318_v33  ;;  %v2323_v35 = vor.u32 %v2452_v5, %v2320_v3  ;;  %v2535_v63 = vld [vmem:[#allocation14 + $0x4] ss:$0 sm:$0xff]  ;;  %v2536_v34 = vld [vmem:[#allocation14 + $0x5] ss:$0 sm:$0xff] }
 0x6de   :  { %v1456_v43 = vpack.c.bf16 %v1454_v37, %v1453_v29  ;;  %v1560_v15 = vmul.f32 %v2605_v8, %v1559_v12  ;;  %1770 = vmatpush.bf16.msra.mxu2 %v2331_v2  ;;  %v2451_v29 = vld [vmem:[#allocation11 + $0x44] sm:$0xf0]  ;;  %v2450_v37 = vld [vmem:[#allocation11 + $0x44] sm:$0xf] }
 0x6e0   :  { %1535 = vmatmul.bf16.gmra.mxu0 %v1456_v43  ;;  %v1561_v16 = vadd.f32 %v2605_v8, %v1560_v15  ;;  %1752 = vmatpush.bf16.msrb.mxu1 %v2319_v13  ;;  %v2311_v43 = vor.u32 %v2451_v29, %v2310_v36  ;;  %v2442_v15 = vld [vmem:[#allocation11 + $0x4] sm:$0xf] }
 0x6e2   :  { %v3268_v17 = vsel %vm1562_vm5, %v2605_v8, %v1561_v16  ;;  %1771 = vmatpush.bf16.msra.mxu2 %v2323_v35  ;;  %v2443_v8 = vld [vmem:[#allocation11 + $0x4] sm:$0xf0]  ;;  %v2280_v16 = vld [vmem:[#allocation11 + $0x8] sm:$0xf0] }
 0x6e4   :  { %1753 = vmatpush.bf16.msrb.mxu1 %v2311_v43  ;;  %v2473_v43 = vld [vmem:[#allocation13 + $0x78] sm:$0xff] }
 0x6e5   :  { %1948 = vmatpush.bf16.msra.mxu0 %v2473_v43 }
 0x729   :  { %v1531_v55 = vpop.f32.mrf.mxu0 }
 0x72a   :  { %v1532_v40 = vadd.f32 %v2534_v38, %v1531_v55  ;;  %v2449_v55 = vld [vmem:[#allocation11 + $0x34] sm:$0xf0] }
 0x72c   :  { %v1545_v41 = vadd.f32 %v1541_v62, %v1532_v40  ;;  %v2302_v62 = vld [vmem:[#allocation11 + $0x30] sm:$0xf]  ;;  %v2448_v40 = vld [vmem:[#allocation11 + $0x34] sm:$0xf] }
 0x72e   :  { %1549 = vadd.xlane.f32.xlu1 %v1545_v41 }
 0x731   :  { %v1533_v44 = vpop.f32.mrf.mxu0 }
 0x732   :  { %v1534_v0 = vadd.f32 %v2534_v38, %v1533_v44 }
 0x734   :  { %v1546_v27 = vadd.f32 %v1542_v42, %v1534_v0  ;;  %v2304_v42 = vld [vmem:[#allocation11 + $0x38] sm:$0xf0]  ;;  %v2294_v0 = vld [vmem:[#allocation11 + $0x20] sm:$0xf] }
 0x735   :  { %v2307_v44 = vor.u32 %v2448_v40, %v2304_v42  ;;  %v2463_v42 = vld [vmem:[#allocation13 + $0x28] sm:$0xff] }
 0x736   :  { %1551 = vadd.xlane.f32.xlu2 %v1546_v27 }
 0x75d   :  { %v1536_v50 = vpop.f32.mrf.mxu0 }
 0x75e   :  { %v1537_v52 = vadd.f32 %v2534_v38, %v1536_v50  ;;  %v2296_v50 = vld [vmem:[#allocation11 + $0x28] sm:$0xf0] }
 0x760   :  { %v1547_v61 = vadd.f32 %v1543_v45, %v1537_v52  ;;  %v2299_v52 = vor.u32 %v2446_v7, %v2296_v50  ;;  %v2462_v7 = vld [vmem:[#allocation13 + $0x20] sm:$0xff] }
 0x762   :  { %1553 = vadd.xlane.f32.xlu0 %v1547_v61 }
 0x765   :  { %v1538_v14 = vpop.f32.mrf.mxu0 }
 0x766   :  { %v1539_v51 = vadd.f32 %v2534_v38, %v1538_v14  ;;  %v2315_v38 = vor.u32 %v2450_v37, %v2312_v59  ;;  %v2444_v14 = vld [vmem:[#allocation11 + $0x14] sm:$0xf]  ;;  %v2465_v37 = vld [vmem:[#allocation13 + $0x38] sm:$0xff] }
 0x767   :  { %1929 = vmatpush.bf16.msrb.mxu3 %v2465_v37 }
 0x768   :  { %v1548_v4 = vadd.f32 %v1544_v1, %v1539_v51  ;;  %1772 = vmatpush.bf16.msra.mxu2 %v2315_v38  ;;  %v2445_v1 = vld [vmem:[#allocation11 + $0x14] sm:$0xf0]  ;;  %v2464_v38 = vld [vmem:[#allocation13 + $0x30] sm:$0xff] }
 0x76a   :  { %1555 = vadd.xlane.f32.xlu2 %v1548_v4 }
 0x76b   :  { %1930 = vmatpush.bf16.msrb.mxu3 %v2464_v38 }
 0x76c   :  { %1773 = vmatpush.bf16.msra.mxu2 %v2307_v44  ;;  %v2471_v44 = vld [vmem:[#allocation13 + $0x68] sm:$0xff] }
 0x76f   :  { %1931 = vmatpush.bf16.msrb.mxu3 %v2463_v42 }
 0x770   :  { %1774 = vmatpush.bf16.msra.mxu2 %v2299_v52 }
 0x773   :  { %1932 = vmatpush.bf16.msrb.mxu3 %v2462_v7 }
 0x7a1   :  { %v1550_v18 = vpop.xlane.xlu1 %1549 }
 0x7a2   :  { %v1564_v20 = vmul.f32 %v3268_v17, %v1550_v18 }
 0x7a4   :  { %v3271_v21 = vsub.f32 %v1545_v41, %v1564_v20  ;;  %v2303_v41 = vor.u32 %v2449_v55, %v2302_v62  ;;  %v2279_v20 = vor.u32 %v2443_v8, %v2278_v6  ;;  %v2472_v62 = vld [vmem:[#allocation13 + $0x70] sm:$0xff] }
 0x7a5   :  { %1949 = vmatpush.bf16.msra.mxu0 %v2472_v62 }
 0x7a6   :  { %v1572_v22 = vmul.f32 %v3271_v21, %v3271_v21  ;;  %1754 = vmatpush.bf16.msrb.mxu1 %v2303_v41 }
 0x7a8   :  { %1576 = vadd.xlane.f32.xlu0 %v1572_v22  ;;  %v2283_v22 = vor.u32 %v2442_v15, %v2280_v16 }
 0x7a9   :  { %v1552_v23 = vpop.xlane.xlu2 %1551  ;;  %1950 = vmatpush.bf16.msra.mxu0 %v2471_v44  ;;  %v2537_v44 = vld [vmem:[#allocation14 + $0x6] ss:$0 sm:$0xff] }
 0x7aa   :  { %v1565_v58 = vmul.f32 %v3268_v17, %v1552_v23 }
 0x7ac   :  { %v3276_v53 = vsub.f32 %v1546_v27, %v1565_v58  ;;  %v2447_v27 = vld [vmem:[#allocation11 + $0x24] sm:$0xf0] }
 0x7ad   :  { %v2295_v45 = vor.u32 %v2447_v27, %v2294_v0 }
 0x7ae   :  { %v1573_v54 = vmul.f32 %v3276_v53, %v3276_v53 }
 0x7af   :  { %1755 = vmatpush.bf16.msrb.mxu1 %v2295_v45 }
 0x7b0   :  { %1578 = vadd.xlane.f32.xlu2 %v1573_v54 }
 0x7d5   :  { %v1554_v26 = vpop.xlane.xlu0 %1553 }
 0x7d6   :  { %v1566_v10 = vmul.f32 %v3268_v17, %v1554_v26 }
 0x7d8   :  { %v3281_v57 = vsub.f32 %v1547_v61, %v1566_v10  ;;  %v2286_v61 = vld [vmem:[#allocation11 + $0x10] sm:$0xf] }
 0x7d9   :  { %v2287_v51 = vor.u32 %v2445_v1, %v2286_v61 }
 0x7da   :  { %v1574_v19 = vmul.f32 %v3281_v57, %v3281_v57 }
 0x7db   :  { %1756 = vmatpush.bf16.msrb.mxu1 %v2287_v51 }
 0x7dc   :  { %1580 = vadd.xlane.f32.xlu0 %v1574_v19 }
 0x7dd   :  { %v1556_v56 = vpop.xlane.xlu2 %1555 }
 0x7de   :  { %v1567_v60 = vmul.f32 %v3268_v17, %v1556_v56 }
 0x7df   :  { %1757 = vmatpush.bf16.msrb.mxu1 %v2279_v20 }
 0x7e0   :  { %v3286_v46 = vsub.f32 %v1548_v4, %v1567_v60  ;;  %v2288_v4 = vld [vmem:[#allocation11 + $0x18] sm:$0xf0] }
 0x7e1   :  { %v2291_v12 = vor.u32 %v2444_v14, %v2288_v4 }
 0x7e2   :  { %v1575_v49 = vmul.f32 %v3286_v46, %v3286_v46 }
 0x7e3   :  { %1775 = vmatpush.bf16.msra.mxu2 %v2291_v12 }
 0x7e4   :  { %1582 = vadd.xlane.f32.xlu2 %v1575_v49 }
 0x7e7   :  { %1776 = vmatpush.bf16.msra.mxu2 %v2283_v22 }
 0x81b   :  { %v1577_v9 = vpop.xlane.xlu0 %1576 }
 0x81c   :  { %v1584_v18 = vmul.f32 %v1577_v9, %v3268_v17 }
 0x81e   :  { %v1588_v23 = vadd.f32 1e-05, %v1584_v18 }
 0x820   :  { %2606 = vrsqrt.f32 %v1588_v23  ;;  %vm1598_vm7 = vweird.f32 %v1588_v23 }
 0x823   :  { %v1579_v58 = vpop.xlane.xlu2 %1578 }
 0x824   :  { %v1585_v54 = vmul.f32 %v1579_v58, %v3268_v17  ;;  %v2460_v58 = vld [vmem:[#allocation13 + $0x10] sm:$0xff] }
 0x826   :  { %v2607_v26 = vpop.eup %2606  ;;  %v1589_v10 = vadd.f32 1e-05, %v1585_v54  ;;  %v2469_v54 = vld [vmem:[#allocation13 + $0x58] sm:$0xff] }
 0x827   :  { %v1593_v19 = vmul.f32 %v2607_v26, %v1588_v23  ;;  %vm1599_vm6 = vweird.f32 %v2607_v26  ;;  %v2461_v23 = vld [vmem:[#allocation13 + $0x18] sm:$0xff] }
 0x828   :  { %2608 = vrsqrt.f32 %v1589_v10  ;;  %vm1600_vm8 = vmor %vm1598_vm7, %vm1599_vm6  ;;  %vm1608_vm10 = vweird.f32 %v1589_v10  ;;  %1933 = vmatpush.bf16.msrb.mxu3 %v2461_v23 }
 0x829   :  { %v1594_v56 = vmul.f32 %v2607_v26, %v1593_v19  ;;  %v2467_v19 = vld [vmem:[#allocation13 + $0x48] sm:$0xff] }
 0x82b   :  { %v1595_v60 = vmul.f32 0.5, %v1594_v56  ;;  %v2466_v56 = vld [vmem:[#allocation13 + $0x40] sm:$0xff] }
 0x82c   :  { %1934 = vmatpush.bf16.msrb.mxu3 %v2460_v58 }
 0x82d   :  { %v1596_v49 = vsub.f32 1.5, %v1595_v60  ;;  %v1664_v60 = vld [vmem:[%s3347_s6] sm:$0x3]  ;;  %s2865_s6 = smov [#allocation16]  }
 0x82e   :  { %v2609_v30 = vpop.eup %2608  ;;  %s2073_s28 = sshll.u32 %s2865_s6, 4  ;;  %s2074_s28 = int_to_ptr.vmem [resolvable:$true] %s2073_s28 }
 0x82f   :  { %v1597_v24 = vmul.f32 %v2607_v26, %v1596_v49  ;;  %v1603_v11 = vmul.f32 %v2609_v30, %v1589_v10  ;;  %vm1609_vm9 = vweird.f32 %v2609_v30  ;;  %v2458_v10 = vld [vmem:[#allocation13] sm:$0xff] }
 0x830   :  { %vm1610_vm11 = vmor %vm1608_vm10, %vm1609_vm9 }
 0x831   :  { %v1604_v28 = vmul.f32 %v2609_v30, %v1603_v11  ;;  %v1601_v47 = vsel %vm1600_vm8, %v2607_v26, %v1597_v24  ;;  %v2468_v26 = vld [vmem:[#allocation13 + $0x50] sm:$0xff] }
 0x832   :  { %v1632_v32 = vmul.f32 %v1601_v47, %v3271_v21  ;;  %v1667_v47 = vperm.slane %v1664_v60, 1 }
 0x833   :  { %v1605_v39 = vmul.f32 0.5, %v1604_v28 }
 0x834   :  { %v1637_v33 = vmul.f32 %v2535_v63, %v1632_v32 }
 0x835   :  { %v1606_v48 = vsub.f32 1.5, %v1605_v39 }
 0x836   :  { %v3294_v13 = vadd.f32 %v2536_v34, %v1637_v33 }
 0x837   :  { %v1607_v31 = vmul.f32 %v2609_v30, %v1606_v48 }
 0x839   :  { %v1611_v25 = vsel %vm1610_vm11, %v2609_v30, %v1607_v31  ;;  %v1666_v30 = vperm.slane %v1664_v60, 0 }
 0x83a   :  { %v1633_v2 = vmul.f32 %v1611_v25, %v3276_v53 }
 0x83c   :  { %v1638_v5 = vmul.f32 %v2535_v63, %v1633_v2 }
 0x83e   :  { %v3296_v3 = vadd.f32 %v2536_v34, %v1638_v5 }
 0x840   :  { %v1646_v35 = vpack.c.bf16 %v3296_v3, %v3294_v13 }
 0x842   :  { %1758 = vmatmul.bf16.vlgmr.msrb.gmra.mxu1 %v1646_v35  ;;  %1777 = vmatmul.bf16.vlgmr.msra.gmra.mxu2 %v1646_v35 }
 0x84f   :  { %v1581_v21 = vpop.xlane.xlu0 %1580 }
 0x850   :  { %v1586_v36 = vmul.f32 %v1581_v21, %v3268_v17 }
 0x852   :  { %v1590_v29 = vadd.f32 1e-05, %v1586_v36 }
 0x854   :  { %2610 = vrsqrt.f32 %v1590_v29  ;;  %vm1618_vm13 = vweird.f32 %v1590_v29 }
 0x857   :  { %v1583_v53 = vpop.xlane.xlu2 %1582 }
 0x858   :  { %v1587_v59 = vmul.f32 %v1583_v53, %v3268_v17 }
 0x85a   :  { %v2611_v55 = vpop.eup %2610  ;;  %v1591_v40 = vadd.f32 1e-05, %v1587_v59 }
 0x85b   :  { %v1613_v41 = vmul.f32 %v2611_v55, %v1590_v29  ;;  %vm1619_vm12 = vweird.f32 %v2611_v55 }
 0x85c   :  { %2612 = vrsqrt.f32 %v1591_v40  ;;  %vm1620_vm14 = vmor %vm1618_vm13, %vm1619_vm12  ;;  %vm1628_vm0 = vweird.f32 %v1591_v40 }
 0x85d   :  { %v1614_v0 = vmul.f32 %v2611_v55, %v1613_v41 }
 0x85f   :  { %v1615_v27 = vmul.f32 0.5, %v1614_v0 }
 0x861   :  { %v1616_v45 = vsub.f32 1.5, %v1615_v27 }
 0x862   :  { %v2613_v50 = vpop.eup %2612 }
 0x863   :  { %v1617_v52 = vmul.f32 %v2611_v55, %v1616_v45  ;;  %v1623_v61 = vmul.f32 %v2613_v50, %v1591_v40  ;;  %vm1629_vm15 = vweird.f32 %v2613_v50 }
 0x864   :  { %vm1630_vm1 = vmor %vm1628_vm0, %vm1629_vm15 }
 0x865   :  { %v1624_v1 = vmul.f32 %v2613_v50, %v1623_v61  ;;  %v1621_v51 = vsel %vm1620_vm14, %v2611_v55, %v1617_v52 }
 0x866   :  { %v1634_v6 = vmul.f32 %v1621_v51, %v3281_v57  ;;  %v2470_v57 = vld [vmem:[#allocation13 + $0x60] sm:$0xff] }
 0x867   :  { %v1625_v14 = vmul.f32 0.5, %v1624_v1  ;;  %1951 = vmatpush.bf16.msra.mxu0 %v2470_v57 }
 0x868   :  { %v1639_v15 = vmul.f32 %v2535_v63, %v1634_v6 }
 0x869   :  { %v1626_v4 = vsub.f32 1.5, %v1625_v14 }
 0x86a   :  { %v3304_v18 = vadd.f32 %v2536_v34, %v1639_v15 }
 0x86b   :  { %v1627_v8 = vmul.f32 %v2613_v50, %v1626_v4  ;;  %1952 = vmatpush.bf16.msra.mxu0 %v2469_v54 }
 0x86d   :  { %v1631_v9 = vsel %vm1630_vm1, %v2613_v50, %v1627_v8 }
 0x86e   :  { %v1635_v12 = vmul.f32 %v1631_v9, %v3286_v46  ;;  %v2459_v46 = vld [vmem:[#allocation13 + $0x8] sm:$0xff] }
 0x86f   :  { %1935 = vmatpush.bf16.msrb.mxu3 %v2459_v46  ;;  %1953 = vmatpush.bf16.msra.mxu0 %v2468_v26 }
 0x870   :  { %v1640_v16 = vmul.f32 %v2535_v63, %v1635_v12 }
 0x872   :  { %v3306_v20 = vadd.f32 %v2536_v34, %v1640_v16 }
 0x873   :  { %1936 = vmatpush.bf16.msrb.mxu3 %v2458_v10  ;;  %1954 = vmatpush.bf16.msra.mxu0 %v2467_v19 }
 0x874   :  { %v1647_v22 = vpack.c.bf16 %v3306_v20, %v3304_v18 }
 0x876   :  { %1763 = vmatmul.bf16.gmra.mxu1 %v1647_v22  ;;  %1782 = vmatmul.bf16.gmra.mxu2 %v1647_v22 }
 0x877   :  { %1955 = vmatpush.bf16.msra.mxu0 %v2466_v56 }
 0x8bf   :  { %v1759_v49 = vpop.f32.mrf.mxu1 }
 0x8c0   :  { %v1760_v11 = vadd.f32 %v1759_v49, %v1666_v30 }
 0x8c2   :  { %v1788_v48 = vmax.f32 %v1760_v11, 0.0 }
 0x8c5   :  { %v1778_v24 = vpop.f32.mrf.mxu2 }
 0x8c6   :  { %v1779_v63 = vadd.f32 %v1778_v24, %v1667_v47 }
 0x8c7   :  { %v1761_v28 = vpop.f32.mrf.mxu1 }
 0x8c8   :  { %v1762_v39 = vadd.f32 %v1761_v28, %v1666_v30  ;;  %v1789_v33 = vmax.f32 %v1779_v63, 0.0 }
 0x8ca   :  { %v1790_v32 = vmax.f32 %v1762_v39, 0.0 }
 0x8cc   :  { %v1796_v31 = vpack.c.bf16 %v1790_v32, %v1788_v48 }
 0x8cd   :  { %v1780_v25 = vpop.f32.mrf.mxu2 }
 0x8ce   :  { %v1781_v2 = vadd.f32 %v1780_v25, %v1667_v47  ;;  %1937 = vmatmul.bf16.vlgmr.msrb.gmra.mxu3 %v1796_v31 }
 0x8d0   :  { %v1791_v34 = vmax.f32 %v1781_v2, 0.0 }
 0x8d2   :  { %v1797_v5 = vpack.c.bf16 %v1791_v34, %v1789_v33 }
 0x8d4   :  { %1956 = vmatmul.bf16.vlgmr.msra.gmra.mxu0 %v1797_v5 }
 0x8f3   :  { %v1764_v35 = vpop.f32.mrf.mxu1 }
 0x8f4   :  { %v1765_v36 = vadd.f32 %v1764_v35, %v1666_v30 }
 0x8f6   :  { %v1792_v43 = vmax.f32 %v1765_v36, 0.0 }
 0x8f9   :  { %v1783_v21 = vpop.f32.mrf.mxu2 }
 0x8fa   :  { %v1784_v59 = vadd.f32 %v1783_v21, %v1667_v47 }
 0x8fb   :  { %v1766_v29 = vpop.f32.mrf.mxu1 }
 0x8fc   :  { %v1767_v37 = vadd.f32 %v1766_v29, %v1666_v30  ;;  %v1793_v40 = vmax.f32 %v1784_v59, 0.0  ;;  %v2538_v59 = vld [vmem:[#allocation14 + $0x7] ss:$0 sm:$0xff] }
 0x8fe   :  { %v1794_v53 = vmax.f32 %v1767_v37, 0.0 }
 0x900   :  { %v1798_v38 = vpack.c.bf16 %v1794_v53, %v1792_v43 }
 0x901   :  { %v1785_v62 = vpop.f32.mrf.mxu2 }
 0x902   :  { %v1786_v55 = vadd.f32 %v1785_v62, %v1667_v47  ;;  %1942 = vmatmul.bf16.gmra.mxu3 %v1798_v38 }
 0x904   :  { %v1795_v41 = vmax.f32 %v1786_v55, 0.0 }
 0x906   :  { %v1799_v42 = vpack.c.bf16 %v1795_v41, %v1793_v40  ;;  %v2539_v41 = vld [vmem:[#allocation14 + $0x8] ss:$0 sm:$0xff] }
 0x908   :  { %1961 = vmatmul.bf16.gmra.mxu0 %v1799_v42 }
 0x951   :  { %v1938_v0 = vpop.f32.mrf.mxu3  ;;  %v1957_v27 = vpop.f32.mrf.mxu0 }
 0x952   :  { %v1939_v7 = vadd.f32 %v2537_v44, %v1938_v0 }
 0x954   :  { %v1958_v45 = vadd.f32 %v1957_v27, %v1939_v7 }
 0x956   :  { %v1967_v50 = vadd.f32 %v1958_v45, %v3294_v13 }
 0x958   :  { %1971 = vadd.xlane.f32.xlu0 %v1967_v50 }
 0x959   :  { %v1940_v52 = vpop.f32.mrf.mxu3  ;;  %v1959_v1 = vpop.f32.mrf.mxu0 }
 0x95a   :  { %v1941_v61 = vadd.f32 %v2537_v44, %v1940_v52 }
 0x95c   :  { %v1960_v14 = vadd.f32 %v1959_v1, %v1941_v61 }
 0x95e   :  { %v1968_v51 = vadd.f32 %v1960_v14, %v3296_v3 }
 0x960   :  { %1973 = vadd.xlane.f32.xlu1 %v1968_v51 }
 0x985   :  { %v1943_v4 = vpop.f32.mrf.mxu3  ;;  %v1962_v6 = vpop.f32.mrf.mxu0 }
 0x986   :  { %v1944_v8 = vadd.f32 %v2537_v44, %v1943_v4 }
 0x988   :  { %v1963_v9 = vadd.f32 %v1962_v6, %v1944_v8 }
 0x98a   :  { %v1969_v12 = vadd.f32 %v1963_v9, %v3304_v18 }
 0x98c   :  { %1975 = vadd.xlane.f32.xlu2 %v1969_v12 }
 0x98d   :  { %v1945_v15 = vpop.f32.mrf.mxu3  ;;  %v1964_v22 = vpop.f32.mrf.mxu0 }
 0x98e   :  { %v1946_v16 = vadd.f32 %v2537_v44, %v1945_v15 }
 0x990   :  { %v1965_v23 = vadd.f32 %v1964_v22, %v1946_v16 }
 0x992   :  { %v1970_v13 = vadd.f32 %v1965_v23, %v3306_v20 }
 0x994   :  { %1977 = vadd.xlane.f32.xlu0 %v1970_v13 }
 0x9cb   :  { %v1972_v57 = vpop.xlane.xlu0 %1971 }
 0x9cc   :  { %v1979_v58 = vmul.f32 %v1972_v57, %v3268_v17 }
 0x9ce   :  { %v1983_v54 = vsub.f32 %v1967_v50, %v1979_v58 }
 0x9d0   :  { %v1987_v3 = vmul.f32 %v1983_v54, %v1983_v54 }
 0x9d2   :  { %1991 = vadd.xlane.f32.xlu1 %v1987_v3 }
 0x9d3   :  { %v1974_v46 = vpop.xlane.xlu1 %1973 }
 0x9d4   :  { %v1980_v26 = vmul.f32 %v1974_v46, %v3268_v17 }
 0x9d6   :  { %v1984_v10 = vsub.f32 %v1968_v51, %v1980_v26 }
 0x9d8   :  { %v1988_v19 = vmul.f32 %v1984_v10, %v1984_v10 }
 0x9da   :  { %1993 = vadd.xlane.f32.xlu2 %v1988_v19 }
 0x9ff   :  { %v1976_v18 = vpop.xlane.xlu2 %1975 }
 0xa00   :  { %v1981_v56 = vmul.f32 %v1976_v18, %v3268_v17 }
 0xa02   :  { %v3320_v60 = vsub.f32 %v1969_v12, %v1981_v56 }
 0xa04   :  { %v1989_v20 = vmul.f32 %v3320_v60, %v3320_v60 }
 0xa06   :  { %1995 = vadd.xlane.f32.xlu0 %v1989_v20 }
 0xa07   :  { %v1978_v49 = vpop.xlane.xlu0 %1977 }
 0xa08   :  { %v1982_v30 = vmul.f32 %v1978_v49, %v3268_v17 }
 0xa0a   :  { %v3325_v24 = vsub.f32 %v1970_v13, %v1982_v30 }
 0xa0c   :  { %v1990_v11 = vmul.f32 %v3325_v24, %v3325_v24 }
 0xa0e   :  { %1997 = vadd.xlane.f32.xlu1 %v1990_v11 }
 0xa45   :  { %v1992_v28 = vpop.xlane.xlu1 %1991 }
 0xa46   :  { %v1999_v47 = vmul.f32 %v1992_v28, %v3268_v17 }
 0xa48   :  { %v2003_v39 = vadd.f32 1e-05, %v1999_v47 }
 0xa4a   :  { %2614 = vrsqrt.f32 %v2003_v39  ;;  %vm2013_vm3 = vweird.f32 %v2003_v39 }
 0xa4d   :  { %v1994_v48 = vpop.xlane.xlu2 %1993 }
 0xa4e   :  { %v2000_v32 = vmul.f32 %v1994_v48, %v3268_v17 }
 0xa50   :  { %v2615_v63 = vpop.eup %2614  ;;  %v2004_v31 = vadd.f32 1e-05, %v2000_v32 }
 0xa51   :  { %v2008_v25 = vmul.f32 %v2615_v63, %v2003_v39  ;;  %vm2014_vm2 = vweird.f32 %v2615_v63 }
 0xa52   :  { %2616 = vrsqrt.f32 %v2004_v31  ;;  %vm2015_vm4 = vmor %vm2013_vm3, %vm2014_vm2  ;;  %vm2023_vm6 = vweird.f32 %v2004_v31 }
 0xa53   :  { %v2009_v2 = vmul.f32 %v2615_v63, %v2008_v25 }
 0xa55   :  { %v2010_v33 = vmul.f32 0.5, %v2009_v2 }
 0xa57   :  { %v2011_v34 = vsub.f32 1.5, %v2010_v33 }
 0xa58   :  { %v2617_v5 = vpop.eup %2616 }
 0xa59   :  { %v2012_v35 = vmul.f32 %v2615_v63, %v2011_v34  ;;  %v2018_v21 = vmul.f32 %v2617_v5, %v2004_v31  ;;  %vm2024_vm5 = vweird.f32 %v2617_v5 }
 0xa5a   :  { %vm2025_vm7 = vmor %vm2023_vm6, %vm2024_vm5 }
 0xa5b   :  { %v2019_v36 = vmul.f32 %v2617_v5, %v2018_v21  ;;  %v2016_v29 = vsel %vm2015_vm4, %v2615_v63, %v2012_v35 }
 0xa5c   :  { %v2047_v53 = vmul.f32 %v2016_v29, %v1983_v54 }
 0xa5d   :  { %v2020_v37 = vmul.f32 0.5, %v2019_v36 }
 0xa5e   :  { %v2052_v40 = vmul.f32 %v2538_v59, %v2047_v53 }
 0xa5f   :  { %v2021_v43 = vsub.f32 1.5, %v2020_v37 }
 0xa60   :  { %v2057_v44 = vadd.f32 %v2539_v41, %v2052_v40 }
 0xa61   :  { %v2022_v38 = vmul.f32 %v2617_v5, %v2021_v43 }
 0xa63   :  { %v2026_v62 = vsel %vm2025_vm7, %v2617_v5, %v2022_v38 }
 0xa64   :  { %v2048_v55 = vmul.f32 %v2026_v62, %v1984_v10 }
 0xa66   :  { %v2053_v42 = vmul.f32 %v2538_v59, %v2048_v55 }
 0xa68   :  { %v2058_v0 = vadd.f32 %v2539_v41, %v2053_v42 }
 0xa6a   :  { %v2477_v27 = vpack.c.bf16 %v2058_v0, %v2057_v44 }
 0xa6c   :  { %2478 = vst [vmem:[#allocation16] sm:$0xff] %v2477_v27  }
 0xa79   :  { %v1996_v7 = vpop.xlane.xlu0 %1995 }
 0xa7a   :  { %v2001_v45 = vmul.f32 %v1996_v7, %v3268_v17 }
 0xa7c   :  { %v2005_v50 = vadd.f32 1e-05, %v2001_v45 }
 0xa7e   :  { %2618 = vrsqrt.f32 %v2005_v50  ;;  %vm2033_vm9 = vweird.f32 %v2005_v50 }
 0xa81   :  { %v1998_v52 = vpop.xlane.xlu1 %1997 }
 0xa82   :  { %v2002_v61 = vmul.f32 %v1998_v52, %v3268_v17 }
 0xa84   :  { %v2619_v1 = vpop.eup %2618  ;;  %v2006_v14 = vadd.f32 1e-05, %v2002_v61 }
 0xa85   :  { %v2028_v51 = vmul.f32 %v2619_v1, %v2005_v50  ;;  %vm2034_vm8 = vweird.f32 %v2619_v1 }
 0xa86   :  { %2620 = vrsqrt.f32 %v2006_v14  ;;  %vm2035_vm10 = vmor %vm2033_vm9, %vm2034_vm8  ;;  %vm2043_vm12 = vweird.f32 %v2006_v14 }
 0xa87   :  { %v2029_v4 = vmul.f32 %v2619_v1, %v2028_v51 }
 0xa89   :  { %v2030_v6 = vmul.f32 0.5, %v2029_v4 }
 0xa8b   :  { %v2031_v8 = vsub.f32 1.5, %v2030_v6 }
 0xa8c   :  { %v2621_v9 = vpop.eup %2620 }
 0xa8d   :  { %v2032_v12 = vmul.f32 %v2619_v1, %v2031_v8  ;;  %v2038_v15 = vmul.f32 %v2621_v9, %v2006_v14  ;;  %vm2044_vm11 = vweird.f32 %v2621_v9 }
 0xa8e   :  { %vm2045_vm13 = vmor %vm2043_vm12, %vm2044_vm11 }
 0xa8f   :  { %v2039_v16 = vmul.f32 %v2621_v9, %v2038_v15  ;;  %v2036_v22 = vsel %vm2035_vm10, %v2619_v1, %v2032_v12 }
 0xa90   :  { %v2049_v17 = vmul.f32 %v2036_v22, %v3320_v60 }
 0xa91   :  { %v2040_v23 = vmul.f32 0.5, %v2039_v16 }
 0xa92   :  { %v2054_v3 = vmul.f32 %v2538_v59, %v2049_v17 }
 0xa93   :  { %v2041_v13 = vsub.f32 1.5, %v2040_v23 }
 0xa94   :  { %v2059_v26 = vadd.f32 %v2539_v41, %v2054_v3 }
 0xa95   :  { %v2042_v57 = vmul.f32 %v2621_v9, %v2041_v13 }
 0xa97   :  { %v2046_v58 = vsel %vm2045_vm13, %v2621_v9, %v2042_v57 }
 0xa98   :  { %v2050_v54 = vmul.f32 %v2046_v58, %v3325_v24 }
 0xa9a   :  { %v2055_v46 = vmul.f32 %v2538_v59, %v2050_v54 }
 0xa9c   :  { %v2060_v10 = vadd.f32 %v2539_v41, %v2055_v46 }
 0xa9e   :  { %v2482_v19 = vpack.c.bf16 %v2060_v10, %v2059_v26 }
 0xaa0   :  { %2484 = vst [vmem:[#allocation16 + $0x8] sm:$0xff] %v2482_v19  }
 0xaa1   :  { %2081 = dma.vmem_to_hbm [thread:$0]  %s2074_s28, 256, %s2076_s30, [#allocation4], %s2851_s17, %s2851_s17, %s2852_s18  }
 0xaa2   :  { %2848 = dma.done.wait [#allocation4], 256  }
 0xaa3   :  { %2849 = vsyncadd [#allocation4], 4294967040 }
 0xaa4   :  { %2086 = vsyncpa [#allocation3], 1 }
 0xaa5   :  { %2087 = vsyncpa [#allocation6], 1 }
 0xaa6   :  { %2088 = vsyncpa [#allocation9], 1 }
 0xaa7   :  { %2089 = vsyncpa [#allocation12], 1 }
 0xaa8   :  { %2090 = vsyncpa [#allocation15], 1 }
 0xaa9   :  { %2091 = vsyncpa [#allocation4], 1 }

</bundles_post_ra>
